<compile_context>
chip_gen: v5e
topology: v5e:2x2
jax: 0.10.0
libtpu: 0.0.40
codegen_flags: <defaults>
</compile_context>

<pallas_src>
import functools

import numpy as np
import jax
import jax.numpy as jnp
from jax.experimental import pallas as pl
from jax.experimental.pallas import tpu as pltpu

WEIGHT_STD = 1e-3          # self.weight_std = 10 ** (-3)
KH = KW = 5                # conv kernel size
C1 = 32                    # conv1 output channels
C2 = 64                    # conv2 output channels
OUT_LANES = 128            # lane-padded width of the prediction output


def _softplus(x):
    # numerically-stable log(1 + exp(x))
    return jnp.maximum(x, 0.0) + jnp.log(1.0 + jnp.exp(-jnp.abs(x)))


def _reparam(mu, rho, e):
    return mu + _softplus(rho) * e


# ----------------------- static Toeplitz gather maps ------------------------ #

def _conv1_toeplitz_indices(cout, cin, kh, kw, w_in, ow):
    """(kh*w_in*cin, ow*cout) gather map.

    Row r = i*(w_in*cin) + w*cin + ci  (matches the height-im2col K layout).
    Col c = parity(ow)*(ow//2 count * cout) + (ow//2)*cout + co  (width-parity major,
    so the 2x2 pool's width half is a contiguous-halves maximum).
    Invalid slots point at a zero appended to the flattened weight.
    """
    zero_slot = cout * cin * kh * kw
    idx = np.full((kh, w_in, cin, ow, cout), zero_slot, dtype=np.int32)
    I, CI, O, CO = np.meshgrid(np.arange(kh), np.arange(cin), np.arange(ow),
                               np.arange(cout), indexing="ij")
    for j in range(kw):
        idx[I, O + j, CI, O, CO] = ((CO * cin + CI) * kh + I) * kw + j
    order = list(range(0, ow, 2)) + list(range(1, ow, 2))     # width-parity major
    idx = idx[:, :, :, order, :]
    return idx.reshape(kh * w_in * cin, ow * cout)


def _conv2_toeplitz_indices(cout, cin, kh, kw, ih, iw, oh, ow):
    """Full 2-D unfold (ih*iw*cin, oh*ow*cout): row = (ph, pw, ci), col = (oh, ow, co)."""
    zero_slot = cout * cin * kh * kw
    PH, PW, CI, OH, OW, CO = np.meshgrid(
        np.arange(ih), np.arange(iw), np.arange(cin),
        np.arange(oh), np.arange(ow), np.arange(cout), indexing="ij")
    dh = PH - OH
    dw = PW - OW
    valid = (dh >= 0) & (dh < kh) & (dw >= 0) & (dw < kw)
    flat = ((CO * cin + CI) * kh + np.clip(dh, 0, kh - 1)) * kw + np.clip(dw, 0, kw - 1)
    idx = np.where(valid, flat, zero_slot).astype(np.int32)
    return idx.reshape(ih * iw * cin, oh * ow * cout)


def _expand(w, idx):
    flat = jnp.concatenate([w.reshape(-1), jnp.zeros((1,), w.dtype)])
    return flat[idx]          # single static gather (XLA glue on parameters)


# ----------------------------- fused forward ------------------------------- #

@functools.partial(jax.jit, static_argnames=("hidden_dims", "btile"))
def discriminator_forward(x_nchw, params, eps, *, hidden_dims, btile=8):
    B, Cin, H, W = x_nchw.shape
    OH1, OW1 = H - KH + 1, W - KW + 1
    PH1, PW1 = OH1 // 2, OW1 // 2
    OH2, OW2 = PH1 - KH + 1, PW1 - KW + 1
    PH2, PW2 = OH2 // 2, OW2 // 2
    assert OH1 % 2 == 0 and OW1 % 2 == 0 and OH2 % 2 == 0 and OW2 % 2 == 0
    # TODO(synk): torch-order (NCHW) flatten for a >1x1 final feature map; with this
    # module's hidden_dims the final spatial size is always 1x1.
    assert PH2 == 1 and PW2 == 1
    D0, D1 = hidden_dims
    assert D0 == PH2 * PW2 * C2

    K1, N1 = KH * W * Cin, OW1 * C1            # conv1:  (ROWS, K1) @ (K1, N1)
    HALF1 = PW1 * C1                           # width-pool half of conv1 output
    K2, N2 = PH1 * PW1 * C1, OH2 * OW2 * C2    # conv2:  (btile, K2) @ (K2, N2)
    ROWS = OH1 * btile                         # conv1 LHS rows per grid step
    HROWS = PH1 * btile                        # rows after the height pool

    # ---- XLA-side glue: reparameterise on compact weights, expand once ----------
    w1c = _reparam(params["W1_conv_mu"], params["W1_conv_rho"], eps["W1_conv"])
    w2c = _reparam(params["W2_conv_mu"], params["W2_conv_rho"], eps["W2_conv"])
    w1f = _reparam(params["W1_mu"], params["W1_rho"], eps["W1"])                # (D0, D1)
    w2f = _reparam(params["W2_mu"], params["W2_rho"], eps["W2"]).reshape(1, D1)  # (1, D1)

    t1 = _expand(w1c, _conv1_toeplitz_indices(C1, Cin, KH, KW, W, OW1))              # (K1, N1)
    t2 = _expand(w2c, _conv2_toeplitz_indices(C2, C1, KH, KW, PH1, PW1, OH2, OW2))   # (K2, N2)

    # ---- XLA-side glue: batch pad + height-im2col with pool-friendly row order ---
    B_pad = -(-B // btile) * btile
    if B_pad != B:
        x_nchw = jnp.concatenate(
            [x_nchw, jnp.zeros((B_pad - B, Cin, H, W), x_nchw.dtype)], axis=0)
    n_tiles = B_pad // btile

    xh = jnp.transpose(x_nchw, (0, 2, 3, 1)).reshape(B_pad, H, W * Cin)
    xcol = jnp.concatenate([xh[:, i:i + OH1, :] for i in range(KH)], axis=-1)  # (B_pad, OH1, K1)
    # Rows within a tile ordered (height-parity, ph, image): the height pool inside
    # the kernel becomes a contiguous-halves maximum.
    xcol = xcol.reshape(n_tiles, btile, PH1, 2, K1)
    xcol = jnp.transpose(xcol, (0, 3, 2, 1, 4)).reshape(n_tiles * ROWS, K1)

    # --------------------------- the single fused kernel --------------------------
    def kernel(x_ref, t1_ref, t2_ref, w1_ref, w2_ref, out_ref):
        f32 = jnp.float32
        # conv1: ONE matmul, M = btile*OH1 rows, K = KH*W*Cin (row shifts stacked in K).
        h1 = jnp.dot(x_ref[...], t1_ref[...], preferred_element_type=f32)   # (ROWS, N1)
        # 2x2 maxpool #1: width-parity halves (lane contiguous), then height halves.
        wmax = jnp.maximum(h1[:, :HALF1], h1[:, HALF1:])                    # (ROWS, HALF1)
        p1 = jnp.maximum(wmax[:HROWS, :], wmax[HROWS:, :])                  # (HROWS, HALF1)
        # Flatten to per-image rows: p1 row order is (ph, image), so each ph slab is
        # all images and lands at lane offset ph*HALF1.
        flat = jnp.concatenate(
            [p1[ph * btile:(ph + 1) * btile, :] for ph in range(PH1)], axis=1)  # (btile, K2)
        # conv2: ONE matmul against the full 2-D Toeplitz.
        h2 = jnp.dot(flat, t2_ref[...], preferred_element_type=f32)         # (btile, N2)
        # 2x2 maxpool #2: oh halves (128-lane aligned), then ow halves.
        m1 = jnp.maximum(h2[:, :OW2 * C2], h2[:, OW2 * C2:])                # (btile, 128)
        m2 = jnp.maximum(m1[:, :C2], m1[:, C2:])                            # (btile, D0)
        # MLP head: leaky_relu(flat @ W1) . W2  (W2 as VPU mul + lane reduction).
        h = jnp.dot(m2, w1_ref[...], preferred_element_type=f32)            # (btile, D1)
        h = jnp.where(h >= 0.0, h, 0.01 * h)
        pred = jnp.sum(h * w2_ref[...], axis=1, keepdims=True)              # (btile, 1)
        out_ref[...] = jnp.broadcast_to(pred, (btile, OUT_LANES))

    out = pl.pallas_call(
        kernel,
        grid=(n_tiles,),
        in_specs=[
            pl.BlockSpec((ROWS, K1), lambda t: (t, 0)),   # batch-tiled activations
            pl.BlockSpec((K1, N1), lambda t: (0, 0)),     # conv1 Toeplitz (batch-invariant)
            pl.BlockSpec((K2, N2), lambda t: (0, 0)),     # conv2 Toeplitz (batch-invariant)
            pl.BlockSpec((D0, D1), lambda t: (0, 0)),     # fc1 weight
            pl.BlockSpec((1, D1), lambda t: (0, 0)),      # fc2 weight (as a row)
        ],
        out_specs=pl.BlockSpec((btile, OUT_LANES), lambda t: (t, 0)),
        out_shape=jax.ShapeDtypeStruct((B_pad, OUT_LANES), jnp.float32),
        compiler_params=pltpu.CompilerParams(
            dimension_semantics=("parallel",),
            vmem_limit_bytes=32 * 1024 * 1024,
        ),
    )(xcol, t1, t2, w1f, w2f)

    return out[:B, :1]                                    # (B, 1)


# ------------------------------ pure-JAX reference -------------------------- #

def reference_forward(x_nchw, params, eps):
    w1_conv = _reparam(params["W1_conv_mu"], params["W1_conv_rho"], eps["W1_conv"])
    w2_conv = _reparam(params["W2_conv_mu"], params["W2_conv_rho"], eps["W2_conv"])
    w1 = _reparam(params["W1_mu"], params["W1_rho"], eps["W1"])
    w2 = _reparam(params["W2_mu"], params["W2_rho"], eps["W2"])

    dn = ("NCHW", "OIHW", "NCHW")

    def pool(h):
        return jax.lax.reduce_window(h, -jnp.inf, jax.lax.max,
                                     (1, 1, 2, 2), (1, 1, 2, 2), "VALID")

    h1 = jax.lax.conv_general_dilated(x_nchw, w1_conv, (1, 1), "VALID",
                                      dimension_numbers=dn)
    h2 = jax.lax.conv_general_dilated(pool(h1), w2_conv, (1, 1), "VALID",
                                      dimension_numbers=dn)
    flat = pool(h2).reshape(x_nchw.shape[0], -1)
    h = flat @ w1
    h = jnp.where(h >= 0.0, h, 0.01 * h)
    return h @ w2


# ------------------------------ param init ---------------------------------- #

def xavier_init(key, size, invert=False):
    in_dim = size[1] if invert else size[0]
    std = 1.0 / jnp.sqrt(in_dim / 2.0)
    return jax.random.normal(key, size, jnp.float32) * std


def init_params_and_noise(key, hidden_dims):
    shapes = {
        "W1_conv": ((C1, 3, KH, KW), True),
        "W2_conv": ((C2, C1, KH, KW), True),
        "W1": ((hidden_dims[0], hidden_dims[1]), False),
        "W2": ((hidden_dims[1], 1), False),
    }
    params, eps = {}, {}
    for name, (shape, invert) in shapes.items():
        key, k_mu, k_rho, k_eps = jax.random.split(key, 4)
        params[name + "_mu"] = xavier_init(k_mu, shape, invert=invert)
        params[name + "_rho"] = xavier_init(k_rho, shape, invert=invert)
        # eps = weight_std * randn  (the non-trainable noise in compute_parameters)
        eps[name] = WEIGHT_STD * jax.random.normal(k_eps, shape, jnp.float32)
    return params, eps


# ---------------------------------- main ------------------------------------ #

if __name__ == "__main__":
    # 3-channel input, two 5x5 valid convs each followed by 2x2 maxpool:
    # 16x16 -> 12 -> 6 -> 2 -> 1, so flatten dim is 64 and hidden_dims=(64, 32).
    B, C, H, W = 2, 3, 16, 16
    hidden_dims = (64, 32)

    key = jax.random.PRNGKey(0)
    key, kx, kp = jax.random.split(key, 3)
    x = jax.random.normal(kx, (B, C, H, W), jnp.float32)
    params, eps = init_params_and_noise(kp, hidden_dims)

    preds = discriminator_forward(x, params, eps, hidden_dims=hidden_dims, btile=8)
    preds = jax.block_until_ready(preds)
    assert preds.shape == (B, 1), preds.shape

    ref = jax.block_until_ready(reference_forward(x, params, eps))
    err = float(jnp.max(jnp.abs(preds - ref)))
    scale = float(jnp.max(jnp.abs(ref))) + 1e-6
    assert err <= 1e-3 * scale + 1e-3, f"mismatch vs reference: {err} (scale {scale})"

    print("KERNEL_OK")
</pallas_src>

<mosaic_0001>
module attributes {stable_mosaic.version = 11 : i64} {
  func.func @kernel(%arg0: i32, %arg1: memref<96x240xf32, #tpu.memory_space<vmem>>, %arg2: memref<240x384xf32, #tpu.memory_space<vmem>>, %arg3: memref<1152x256xf32, #tpu.memory_space<vmem>>, %arg4: memref<64x32xf32, #tpu.memory_space<vmem>>, %arg5: memref<1x32xf32, #tpu.memory_space<vmem>>, %arg6: memref<8x128xf32, #tpu.memory_space<vmem>>) attributes {dimension_semantics = [#tpu.dimension_semantics<parallel>], iteration_bounds = array<i64: 1>, scalar_prefetch = 0 : i64, scratch_operands = 0 : i64, tpu.core_type = #tpu.core_type<tc>, window_params = [{transform_indices = @transform_0, window_bounds = array<i64: 96, 240>}, {pipeline_mode = #tpu.pipeline_mode<synchronous>, transform_indices = @transform_1, window_bounds = array<i64: 240, 384>}, {pipeline_mode = #tpu.pipeline_mode<synchronous>, transform_indices = @transform_2, window_bounds = array<i64: 1152, 256>}, {pipeline_mode = #tpu.pipeline_mode<synchronous>, transform_indices = @transform_3, window_bounds = array<i64: 64, 32>}, {pipeline_mode = #tpu.pipeline_mode<synchronous>, transform_indices = @transform_4, window_bounds = array<i64: 1, 32>}, {transform_indices = @transform_5, window_bounds = array<i64: 8, 128>}]} {
    %c0 = arith.constant 0 : index
    %c0_0 = arith.constant 0 : index
    %0 = vector.load %arg1[%c0, %c0_0] : memref<96x240xf32, #tpu.memory_space<vmem>>, vector<96x240xf32>
    %c0_1 = arith.constant 0 : index
    %c0_2 = arith.constant 0 : index
    %1 = vector.load %arg2[%c0_1, %c0_2] : memref<240x384xf32, #tpu.memory_space<vmem>>, vector<240x384xf32>
    %cst = arith.constant dense<0.000000e+00> : vector<96x384xf32>
    %2 = tpu.matmul %0, %1, %cst {dimension_numbers = #tpu.dot_dimension_numbers<[1], [0], [0], [1], [0, 0, 1, 1], [], []>} : vector<96x240xf32>, vector<240x384xf32>, vector<96x384xf32> -> vector<96x384xf32>
    %3 = vector.extract_strided_slice %2 {offsets = [0, 0], sizes = [96, 192], strides = [1, 1]} : vector<96x384xf32> to vector<96x192xf32>
    %4 = vector.extract_strided_slice %2 {offsets = [0, 192], sizes = [96, 192], strides = [1, 1]} : vector<96x384xf32> to vector<96x192xf32>
    %5 = arith.maximumf %3, %4 : vector<96x192xf32>
    %6 = vector.extract_strided_slice %5 {offsets = [0, 0], sizes = [48, 192], strides = [1, 1]} : vector<96x192xf32> to vector<48x192xf32>
    %7 = vector.extract_strided_slice %5 {offsets = [48, 0], sizes = [48, 192], strides = [1, 1]} : vector<96x192xf32> to vector<48x192xf32>
    %8 = arith.maximumf %6, %7 : vector<48x192xf32>
    %9 = vector.extract_strided_slice %8 {offsets = [0, 0], sizes = [8, 192], strides = [1, 1]} : vector<48x192xf32> to vector<8x192xf32>
    %10 = vector.extract_strided_slice %8 {offsets = [8, 0], sizes = [8, 192], strides = [1, 1]} : vector<48x192xf32> to vector<8x192xf32>
    %11 = vector.extract_strided_slice %8 {offsets = [16, 0], sizes = [8, 192], strides = [1, 1]} : vector<48x192xf32> to vector<8x192xf32>
    %12 = vector.extract_strided_slice %8 {offsets = [24, 0], sizes = [8, 192], strides = [1, 1]} : vector<48x192xf32> to vector<8x192xf32>
    %13 = vector.extract_strided_slice %8 {offsets = [32, 0], sizes = [8, 192], strides = [1, 1]} : vector<48x192xf32> to vector<8x192xf32>
    %14 = vector.extract_strided_slice %8 {offsets = [40, 0], sizes = [8, 192], strides = [1, 1]} : vector<48x192xf32> to vector<8x192xf32>
    %15 = tpu.concatenate %9, %10, %11, %12, %13, %14 in 1 : vector<8x192xf32>, vector<8x192xf32>, vector<8x192xf32>, vector<8x192xf32>, vector<8x192xf32>, vector<8x192xf32> -> vector<8x1152xf32>
    %c0_3 = arith.constant 0 : index
    %c0_4 = arith.constant 0 : index
    %16 = vector.load %arg3[%c0_3, %c0_4] : memref<1152x256xf32, #tpu.memory_space<vmem>>, vector<1152x256xf32>
    %cst_5 = arith.constant dense<0.000000e+00> : vector<8x256xf32>
    %17 = tpu.matmul %15, %16, %cst_5 {dimension_numbers = #tpu.dot_dimension_numbers<[1], [0], [0], [1], [0, 0, 1, 1], [], []>} : vector<8x1152xf32>, vector<1152x256xf32>, vector<8x256xf32> -> vector<8x256xf32>
    %18 = vector.extract_strided_slice %17 {offsets = [0, 0], sizes = [8, 128], strides = [1, 1]} : vector<8x256xf32> to vector<8x128xf32>
    %19 = vector.extract_strided_slice %17 {offsets = [0, 128], sizes = [8, 128], strides = [1, 1]} : vector<8x256xf32> to vector<8x128xf32>
    %20 = arith.maximumf %18, %19 : vector<8x128xf32>
    %21 = vector.extract_strided_slice %20 {offsets = [0, 0], sizes = [8, 64], strides = [1, 1]} : vector<8x128xf32> to vector<8x64xf32>
    %22 = vector.extract_strided_slice %20 {offsets = [0, 64], sizes = [8, 64], strides = [1, 1]} : vector<8x128xf32> to vector<8x64xf32>
    %23 = arith.maximumf %21, %22 : vector<8x64xf32>
    %c0_6 = arith.constant 0 : index
    %c0_7 = arith.constant 0 : index
    %24 = vector.load %arg4[%c0_6, %c0_7] : memref<64x32xf32, #tpu.memory_space<vmem>>, vector<64x32xf32>
    %cst_8 = arith.constant dense<0.000000e+00> : vector<8x32xf32>
    %25 = tpu.matmul %23, %24, %cst_8 {dimension_numbers = #tpu.dot_dimension_numbers<[1], [0], [0], [1], [0, 0, 1, 1], [], []>} : vector<8x64xf32>, vector<64x32xf32>, vector<8x32xf32> -> vector<8x32xf32>
    %cst_9 = arith.constant 0.000000e+00 : f32
    %26 = vector.broadcast %cst_9 : f32 to vector<8x32xf32>
    %27 = arith.cmpf oge, %25, %26 : vector<8x32xf32>
    %cst_10 = arith.constant 0.00999999977 : f32
    %28 = vector.broadcast %cst_10 : f32 to vector<8x32xf32>
    %29 = arith.mulf %28, %25 : vector<8x32xf32>
    %30 = arith.select %27, %25, %29 : vector<8x32xi1>, vector<8x32xf32>
    %c0_11 = arith.constant 0 : index
    %c0_12 = arith.constant 0 : index
    %31 = vector.load %arg5[%c0_11, %c0_12] : memref<1x32xf32, #tpu.memory_space<vmem>>, vector<1x32xf32>
    %32 = vector.broadcast %31 : vector<1x32xf32> to vector<8x32xf32>
    %33 = arith.mulf %30, %32 : vector<8x32xf32>
    %cst_13 = arith.constant dense<0.000000e+00> : vector<8xf32>
    %34 = vector.multi_reduction <add>, %33, %cst_13 [1] : vector<8x32xf32> to vector<8xf32>
    %35 = vector.shape_cast %34 : vector<8xf32> to vector<8x1xf32>
    %36 = vector.shape_cast %35 : vector<8x1xf32> to vector<8x1xf32>
    %37 = vector.broadcast %36 : vector<8x1xf32> to vector<8x128xf32>
    %c0_14 = arith.constant 0 : index
    %c0_15 = arith.constant 0 : index
    %38 = vector.load %arg6[%c0_14, %c0_15] : memref<8x128xf32, #tpu.memory_space<vmem>>, vector<8x128xf32>
    tpu.vector_store %arg6[%c0_14, %c0_15], %37 {strides = array<i32>} : memref<8x128xf32, #tpu.memory_space<vmem>>, vector<8x128xf32>,
    return
  }
  func.func @transform_0(%arg0: i32) -> (i32, i32) {
    %c0_i32 = arith.constant 0 : i32
    %c0_i32_0 = arith.constant 0 : i32
    return %arg0, %c0_i32 : i32, i32
  }
  func.func @transform_1(%arg0: i32) -> (i32, i32) {
    %c0_i32 = arith.constant 0 : i32
    %c0_i32_0 = arith.constant 0 : i32
    %c0_i32_1 = arith.constant 0 : i32
    return %c0_i32, %c0_i32_0 : i32, i32
  }
  func.func @transform_2(%arg0: i32) -> (i32, i32) {
    %c0_i32 = arith.constant 0 : i32
    %c0_i32_0 = arith.constant 0 : i32
    %c0_i32_1 = arith.constant 0 : i32
    return %c0_i32, %c0_i32_0 : i32, i32
  }
  func.func @transform_3(%arg0: i32) -> (i32, i32) {
    %c0_i32 = arith.constant 0 : i32
    %c0_i32_0 = arith.constant 0 : i32
    %c0_i32_1 = arith.constant 0 : i32
    return %c0_i32, %c0_i32_0 : i32, i32
  }
  func.func @transform_4(%arg0: i32) -> (i32, i32) {
    %c0_i32 = arith.constant 0 : i32
    %c0_i32_0 = arith.constant 0 : i32
    %c0_i32_1 = arith.constant 0 : i32
    return %c0_i32, %c0_i32_0 : i32, i32
  }
  func.func @transform_5(%arg0: i32) -> (i32, i32) {
    %c0_i32 = arith.constant 0 : i32
    %c0_i32_0 = arith.constant 0 : i32
    return %arg0, %c0_i32 : i32, i32
  }
}

</mosaic_0001>

<bundles_post_ra>
// kernel: discriminator_forward.1
= control target key start
LH: loop header
LB: loop body
LE: loop exit
PB: predicated region body
PF: predicated region fallthrough
CT: control target
= control target key end

     0   :  { %vm134_vm0 = vcmask 916480   ;;  %vm561_vm1 = vcmask 523264   ;;  %vm1357_vm3 = vcmask 261120   ;;  %s3129_s1 = inlined_call_operand.vmem [shape: f32[240,384], index: 1, kind: input, shape index: {}]   ;;  %s3130_s0 = inlined_call_operand.vmem [shape: f32[96,240], index: 0, kind: input, shape index: {}]   ;;  %s3131_s2 = inlined_call_operand.vmem [shape: f32[1152,256], index: 2, kind: input, shape index: {}]   ;;  %s3132_s3 = inlined_call_operand.vmem [shape: f32[64,32], index: 3, kind: input, shape index: {}]   ;;  %s3133_s4 = inlined_call_operand.vmem [shape: f32[1,32], index: 4, kind: input, shape index: {}]   ;;  %s3134_s5 = inlined_call_operand.vmem [shape: f32[8,128], index: 5, kind: output, shape index: {}]  }
   0x1   :  { %v90_v0 = vld [vmem:[%s3129_s1 + $0x170] sm:$0xff]  ;;  %v132_v1 = vld [vmem:[%s3129_s1 + $0x2c0] sm:$0xff]  ;;  %v89_v2 = vld [vmem:[%s3129_s1 + $0x168] sm:$0xff] }
   0x2   :  { %277 = vmatpush.msra.mxu2 %v90_v0  ;;  %332 = vmatpush.msra.mxu3 %v132_v1  ;;  %v87_v3 = vld [vmem:[%s3129_s1 + $0x158] sm:$0xff]  ;;  %v129_v4 = vld [vmem:[%s3129_s1 + $0x2a8] sm:$0xff]  ;;  %v86_v5 = vld [vmem:[%s3129_s1 + $0x150] sm:$0xff] }
   0x3   :  { %171 = vmatpush.msra.mxu0 %v89_v2  ;;  %v84_v6 = vld [vmem:[%s3129_s1 + $0x140] sm:$0xff]  ;;  %v126_v7 = vld [vmem:[%s3129_s1 + $0x290] sm:$0xff]  ;;  %v83_v8 = vld [vmem:[%s3129_s1 + $0x138] sm:$0xff] }
   0x4   :  { %278 = vmatpush.msra.mxu2 %v87_v3  ;;  %333 = vmatpush.msra.mxu3 %v129_v4  ;;  %v131_v9 = vld [vmem:[%s3129_s1 + $0x2b8] sm:$0xff]  ;;  %v81_v10 = vld [vmem:[%s3129_s1 + $0x128] sm:$0xff]  ;;  %v128_v12 = vld [vmem:[%s3129_s1 + $0x2a0] sm:$0xff] }
   0x5   :  { %172 = vmatpush.msra.mxu0 %v86_v5  ;;  %226 = vmatpush.msra.mxu1 %v131_v9  ;;  %v123_v11 = vld [vmem:[%s3129_s1 + $0x278] sm:$0xff]  ;;  %v80_v13 = vld [vmem:[%s3129_s1 + $0x120] sm:$0xff]  ;;  %v125_v14 = vld [vmem:[%s3129_s1 + $0x288] sm:$0xff] }
   0x6   :  { %279 = vmatpush.msra.mxu2 %v84_v6  ;;  %334 = vmatpush.msra.mxu3 %v126_v7  ;;  %v78_v15 = vld [vmem:[%s3129_s1 + $0x110] sm:$0xff]  ;;  %v120_v16 = vld [vmem:[%s3129_s1 + $0x260] sm:$0xff]  ;;  %v77_v17 = vld [vmem:[%s3129_s1 + $0x108] sm:$0xff] }
   0x7   :  { %173 = vmatpush.msra.mxu0 %v83_v8  ;;  %227 = vmatpush.msra.mxu1 %v128_v12  ;;  %v122_v18 = vld [vmem:[%s3129_s1 + $0x270] sm:$0xff]  ;;  %v75_v19 = vld [vmem:[%s3129_s1 + $0xf8] sm:$0xff]  ;;  %v117_v20 = vld [vmem:[%s3129_s1 + $0x248] sm:$0xff] }
   0x8   :  { %280 = vmatpush.msra.mxu2 %v81_v10  ;;  %335 = vmatpush.msra.mxu3 %v123_v11  ;;  %v74_v21 = vld [vmem:[%s3129_s1 + $0xf0] sm:$0xff]  ;;  %v119_v22 = vld [vmem:[%s3129_s1 + $0x258] sm:$0xff]  ;;  %v72_v23 = vld [vmem:[%s3129_s1 + $0xe0] sm:$0xff] }
   0x9   :  { %174 = vmatpush.msra.mxu0 %v80_v13  ;;  %228 = vmatpush.msra.mxu1 %v125_v14  ;;  %v114_v24 = vld [vmem:[%s3129_s1 + $0x230] sm:$0xff]  ;;  %v71_v25 = vld [vmem:[%s3129_s1 + $0xd8] sm:$0xff]  ;;  %v116_v26 = vld [vmem:[%s3129_s1 + $0x240] sm:$0xff] }
   0xa   :  { %281 = vmatpush.msra.mxu2 %v78_v15  ;;  %336 = vmatpush.msra.mxu3 %v120_v16  ;;  %v69_v27 = vld [vmem:[%s3129_s1 + $0xc8] sm:$0xff]  ;;  %v111_v28 = vld [vmem:[%s3129_s1 + $0x218] sm:$0xff]  ;;  %v68_v29 = vld [vmem:[%s3129_s1 + $0xc0] sm:$0xff] }
   0xb   :  { %175 = vmatpush.msra.mxu0 %v77_v17  ;;  %229 = vmatpush.msra.mxu1 %v122_v18  ;;  %v113_v30 = vld [vmem:[%s3129_s1 + $0x228] sm:$0xff]  ;;  %v66_v31 = vld [vmem:[%s3129_s1 + $0xb0] sm:$0xff]  ;;  %v108_v32 = vld [vmem:[%s3129_s1 + $0x200] sm:$0xff] }
   0xc   :  { %282 = vmatpush.msra.mxu2 %v75_v19  ;;  %337 = vmatpush.msra.mxu3 %v117_v20  ;;  %v65_v33 = vld [vmem:[%s3129_s1 + $0xa8] sm:$0xff]  ;;  %v110_v34 = vld [vmem:[%s3129_s1 + $0x210] sm:$0xff]  ;;  %v63_v35 = vld [vmem:[%s3129_s1 + $0x98] sm:$0xff] }
   0xd   :  { %176 = vmatpush.msra.mxu0 %v74_v21  ;;  %230 = vmatpush.msra.mxu1 %v119_v22  ;;  %v105_v36 = vld [vmem:[%s3129_s1 + $0x1e8] sm:$0xff]  ;;  %v62_v37 = vld [vmem:[%s3129_s1 + $0x90] sm:$0xff]  ;;  %v107_v38 = vld [vmem:[%s3129_s1 + $0x1f8] sm:$0xff] }
   0xe   :  { %283 = vmatpush.msra.mxu2 %v72_v23  ;;  %338 = vmatpush.msra.mxu3 %v114_v24  ;;  %v60_v39 = vld [vmem:[%s3129_s1 + $0x80] sm:$0xff]  ;;  %v102_v40 = vld [vmem:[%s3129_s1 + $0x1d0] sm:$0xff]  ;;  %v59_v41 = vld [vmem:[%s3129_s1 + $0x78] sm:$0xff] }
   0xf   :  { %177 = vmatpush.msra.mxu0 %v71_v25  ;;  %231 = vmatpush.msra.mxu1 %v116_v26  ;;  %v104_v42 = vld [vmem:[%s3129_s1 + $0x1e0] sm:$0xff]  ;;  %v57_v43 = vld [vmem:[%s3129_s1 + $0x68] sm:$0xff]  ;;  %v99_v44 = vld [vmem:[%s3129_s1 + $0x1b8] sm:$0xff] }
  0x10   :  { %284 = vmatpush.msra.mxu2 %v69_v27  ;;  %339 = vmatpush.msra.mxu3 %v111_v28  ;;  %v56_v45 = vld [vmem:[%s3129_s1 + $0x60] sm:$0xff]  ;;  %v101_v46 = vld [vmem:[%s3129_s1 + $0x1c8] sm:$0xff]  ;;  %v54_v47 = vld [vmem:[%s3129_s1 + $0x50] sm:$0xff] }
  0x11   :  { %178 = vmatpush.msra.mxu0 %v68_v29  ;;  %232 = vmatpush.msra.mxu1 %v113_v30  ;;  %v96_v48 = vld [vmem:[%s3129_s1 + $0x1a0] sm:$0xff]  ;;  %v53_v49 = vld [vmem:[%s3129_s1 + $0x48] sm:$0xff]  ;;  %v98_v50 = vld [vmem:[%s3129_s1 + $0x1b0] sm:$0xff] }
  0x12   :  { %285 = vmatpush.msra.mxu2 %v66_v31  ;;  %340 = vmatpush.msra.mxu3 %v108_v32  ;;  %v51_v51 = vld [vmem:[%s3129_s1 + $0x38] sm:$0xff]  ;;  %v93_v52 = vld [vmem:[%s3129_s1 + $0x188] sm:$0xff]  ;;  %v50_v54 = vld [vmem:[%s3129_s1 + $0x30] sm:$0xff] }
  0x13   :  { %179 = vmatpush.msra.mxu0 %v65_v33  ;;  %233 = vmatpush.msra.mxu1 %v110_v34  ;;  %v1663_v53 = vld [vmem:[%s3130_s0 + $0x8] sm:$0xff]  ;;  %v48_v55 = vld [vmem:[%s3129_s1 + $0x20] sm:$0xff]  ;;  %v95_v56 = vld [vmem:[%s3129_s1 + $0x198] sm:$0xff] }
  0x14   :  { %286 = vmatpush.msra.mxu2 %v63_v35  ;;  %341 = vmatpush.msra.mxu3 %v105_v36  ;;  %v47_v57 = vld [vmem:[%s3129_s1 + $0x18] sm:$0xff]  ;;  %v45_v58 = vld [vmem:[%s3129_s1 + $0x8] sm:$0xff]  ;;  %v92_v59 = vld [vmem:[%s3129_s1 + $0x180] sm:$0xff] }
  0x15   :  { %180 = vmatpush.msra.mxu0 %v62_v37  ;;  %234 = vmatpush.msra.mxu1 %v107_v38  ;;  %v1688_v60 = vld [vmem:[%s3130_s0] sm:$0xff]  ;;  %v1700_v62 = vld [vmem:[%s3130_s0 + $0x18] sm:$0xff]  ;;  %v1707_v63 = vld [vmem:[%s3130_s0 + $0x10] sm:$0xff] }
  0x16   :  { %287 = vmatpush.msra.mxu2 %v60_v39  ;;  %342 = vmatpush.msra.mxu3 %v102_v40  ;;  %v44_v61 = vld [vmem:[%s3129_s1] sm:$0xff]  ;;  %v133_v0 = vld [vmem:[%s3129_s1 + $0x2c8] sm:$0xff]  ;;  %v91_v2 = vld [vmem:[%s3129_s1 + $0x178] sm:$0xff] }
  0x17   :  { %181 = vmatpush.msra.mxu0 %v59_v41  ;;  %235 = vmatpush.msra.mxu1 %v104_v42  ;;  %v1719_v1 = vld [vmem:[%s3130_s0 + $0x28] sm:$0xff]  ;;  %v1729_v3 = vld [vmem:[%s3130_s0 + $0x20] sm:$0xff]  ;;  %v130_v4 = vld [vmem:[%s3129_s1 + $0x2b0] sm:$0xff] }
  0x18   :  { %288 = vmatpush.msra.mxu2 %v57_v43  ;;  %343 = vmatpush.msra.mxu3 %v99_v44  ;;  %v1741_v5 = vld [vmem:[%s3130_s0 + $0x38] sm:$0xff]  ;;  %v88_v6 = vld [vmem:[%s3129_s1 + $0x160] sm:$0xff]  ;;  %v1754_v8 = vld [vmem:[%s3130_s0 + $0x30] sm:$0xff] }
  0x19   :  { %182 = vmatpush.msra.mxu0 %v56_v45  ;;  %236 = vmatpush.msra.mxu1 %v101_v46  ;;  %v127_v7 = vld [vmem:[%s3129_s1 + $0x298] sm:$0xff]  ;;  %v1763_v9 = vld [vmem:[%s3130_s0 + $0x48] sm:$0xff]  ;;  %v124_v11 = vld [vmem:[%s3129_s1 + $0x280] sm:$0xff] }
  0x1a   :  { %289 = vmatpush.msra.mxu2 %v54_v47  ;;  %344 = vmatpush.msra.mxu3 %v96_v48  ;;  %v85_v10 = vld [vmem:[%s3129_s1 + $0x148] sm:$0xff]  ;;  %v1776_v12 = vld [vmem:[%s3130_s0 + $0x40] sm:$0xff]  ;;  %v82_v13 = vld [vmem:[%s3129_s1 + $0x130] sm:$0xff] }
  0x1b   :  { %183 = vmatpush.msra.mxu0 %v53_v49  ;;  %237 = vmatpush.msra.mxu1 %v98_v50  ;;  %v1788_v14 = vld [vmem:[%s3130_s0 + $0x58] sm:$0xff]  ;;  %v121_v15 = vld [vmem:[%s3129_s1 + $0x268] sm:$0xff]  ;;  %v1801_v17 = vld [vmem:[%s3130_s0 + $0x50] sm:$0xff] }
  0x1c   :  { %290 = vmatpush.msra.mxu2 %v51_v51  ;;  %345 = vmatpush.msra.mxu3 %v93_v52  ;;  %v79_v16 = vld [vmem:[%s3129_s1 + $0x118] sm:$0xff]  ;;  %v1810_v18 = vld [vmem:[%s3130_s0 + $0x68] sm:$0xff]  ;;  %v118_v19 = vld [vmem:[%s3129_s1 + $0x250] sm:$0xff] }
  0x1d   :  { %1378 = vmatmul.msk.f32.vlgmr.msra.gmra.mxu3 %vm134_vm0, %v1663_v53  ;;  %184 = vmatpush.msra.mxu0 %v50_v54  ;;  %v76_v20 = vld [vmem:[%s3129_s1 + $0x100] sm:$0xff]  ;;  %v115_v21 = vld [vmem:[%s3129_s1 + $0x238] sm:$0xff]  ;;  %v73_v22 = vld [vmem:[%s3129_s1 + $0xe8] sm:$0xff] }
  0x1e   :  { %291 = vmatpush.msra.mxu2 %v48_v55  ;;  %238 = vmatpush.msra.mxu1 %v95_v56  ;;  %v1829_v23 = vld [vmem:[%s3130_s0 + $0x60] sm:$0xff]  ;;  %v70_v25 = vld [vmem:[%s3129_s1 + $0xd0] sm:$0xff]  ;;  %v109_v26 = vld [vmem:[%s3129_s1 + $0x208] sm:$0xff] }
  0x1f   :  { %185 = vmatpush.msra.mxu0 %v47_v57  ;;  %438 = vmatpush.msrb.mxu3 %v133_v0  ;;  %v112_v24 = vld [vmem:[%s3129_s1 + $0x220] sm:$0xff]  ;;  %v1847_v27 = vld [vmem:[%s3130_s0 + $0x78] sm:$0xff]  ;;  %v106_v29 = vld [vmem:[%s3129_s1 + $0x1f0] sm:$0xff] }
  0x20   :  { %292 = vmatpush.msra.mxu2 %v45_v58  ;;  %239 = vmatpush.msra.mxu1 %v92_v59  ;;  %v67_v28 = vld [vmem:[%s3129_s1 + $0xb8] sm:$0xff]  ;;  %v64_v30 = vld [vmem:[%s3129_s1 + $0xa0] sm:$0xff]  ;;  %v1866_v32 = vld [vmem:[%s3130_s0 + $0x70] sm:$0xff] }
  0x21   :  { %293 = vmatmul.f32.vlgmr.msra.gmra.mxu2 %v1688_v60  ;;  %186 = vmatpush.msra.mxu0 %v44_v61  ;;  %v103_v31 = vld [vmem:[%s3129_s1 + $0x1d8] sm:$0xff]  ;;  %v61_v33 = vld [vmem:[%s3129_s1 + $0x88] sm:$0xff]  ;;  %v100_v34 = vld [vmem:[%s3129_s1 + $0x1c0] sm:$0xff] }
  0x22   :  { %187 = vmatmul.f32.vlgmr.msra.gmra.mxu0 %v1688_v60  ;;  %1366 = vmatmul.msk.f32.vlgmr.msra.gmra.mxu1 %vm134_vm0, %v1663_v53  ;;  %v58_v35 = vld [vmem:[%s3129_s1 + $0x70] sm:$0xff]  ;;  %v1884_v36 = vld [vmem:[%s3130_s0 + $0x88] sm:$0xff]  ;;  %v55_v37 = vld [vmem:[%s3129_s1 + $0x58] sm:$0xff] }
  0x23   :  { %383 = vmatpush.msrb.mxu1 %v91_v2  ;;  %439 = vmatpush.msrb.mxu3 %v130_v4  ;;  %v97_v38 = vld [vmem:[%s3129_s1 + $0x1a8] sm:$0xff]  ;;  %v94_v39 = vld [vmem:[%s3129_s1 + $0x190] sm:$0xff]  ;;  %v52_v40 = vld [vmem:[%s3129_s1 + $0x40] sm:$0xff] }
  0x24   :  { %v1903_v41 = vld [vmem:[%s3130_s0 + $0x80] sm:$0xff]  ;;  %v49_v42 = vld [vmem:[%s3129_s1 + $0x28] sm:$0xff]  ;;  %v46_v43 = vld [vmem:[%s3129_s1 + $0x10] sm:$0xff] }
  0x25   :  { %1379 = vmatmul.msk.f32.gmra.mxu3 %vm134_vm0, %v1700_v62  ;;  %384 = vmatpush.msrb.mxu1 %v88_v6  ;;  %v39_v44 = vld [vmem:[%s3130_s0 + $0x98] sm:$0xff]  ;;  %v38_v45 = vld [vmem:[%s3130_s0 + $0x90] sm:$0xff]  ;;  %v41_v46 = vld [vmem:[%s3130_s0 + $0xa8] sm:$0xff] }
  0x26   :  { %440 = vmatpush.msrb.mxu3 %v127_v7  ;;  %v40_v47 = vld [vmem:[%s3130_s0 + $0xa0] sm:$0xff]  ;;  %v43_v48 = vld [vmem:[%s3130_s0 + $0xb8] sm:$0xff]  ;;  %v42_v49 = vld [vmem:[%s3130_s0 + $0xb0] sm:$0xff]  ;;  %s1470_s0 = smov 64  }
  0x27   :  { %385 = vmatpush.msrb.mxu1 %v85_v10 }
  0x28   :  { %441 = vmatpush.msrb.mxu3 %v124_v11 }
  0x29   :  { %296 = vmatmul.f32.gmra.mxu2 %v1707_v63  ;;  %386 = vmatpush.msrb.mxu1 %v82_v13 }
  0x2a   :  { %190 = vmatmul.f32.gmra.mxu0 %v1707_v63  ;;  %1367 = vmatmul.msk.f32.gmra.mxu1 %vm134_vm0, %v1700_v62 }
  0x2b   :  { %442 = vmatpush.msrb.mxu3 %v121_v15  ;;  %387 = vmatpush.msrb.mxu1 %v79_v16 }
  0x2d   :  { %1380 = vmatmul.msk.f32.gmra.mxu3 %vm134_vm0, %v1719_v1  ;;  %388 = vmatpush.msrb.mxu1 %v76_v20 }
  0x2e   :  { %443 = vmatpush.msrb.mxu3 %v118_v19 }
  0x2f   :  { %389 = vmatpush.msrb.mxu1 %v73_v22 }
  0x30   :  { %444 = vmatpush.msrb.mxu3 %v115_v21 }
  0x31   :  { %299 = vmatmul.f32.gmra.mxu2 %v1729_v3  ;;  %390 = vmatpush.msrb.mxu1 %v70_v25 }
  0x32   :  { %193 = vmatmul.f32.gmra.mxu0 %v1729_v3  ;;  %1368 = vmatmul.msk.f32.gmra.mxu1 %vm134_vm0, %v1719_v1 }
  0x33   :  { %445 = vmatpush.msrb.mxu3 %v112_v24  ;;  %391 = vmatpush.msrb.mxu1 %v67_v28 }
  0x35   :  { %1381 = vmatmul.msk.f32.gmra.mxu3 %vm134_vm0, %v1741_v5  ;;  %392 = vmatpush.msrb.mxu1 %v64_v30 }
  0x36   :  { %446 = vmatpush.msrb.mxu3 %v109_v26 }
  0x37   :  { %393 = vmatpush.msrb.mxu1 %v61_v33 }
  0x38   :  { %447 = vmatpush.msrb.mxu3 %v106_v29 }
  0x39   :  { %302 = vmatmul.f32.gmra.mxu2 %v1754_v8  ;;  %394 = vmatpush.msrb.mxu1 %v58_v35 }
  0x3a   :  { %196 = vmatmul.f32.gmra.mxu0 %v1754_v8  ;;  %1369 = vmatmul.msk.f32.gmra.mxu1 %vm134_vm0, %v1741_v5 }
  0x3b   :  { %448 = vmatpush.msrb.mxu3 %v103_v31  ;;  %395 = vmatpush.msrb.mxu1 %v55_v37 }
  0x3d   :  { %1382 = vmatmul.msk.f32.gmra.mxu3 %vm134_vm0, %v1763_v9  ;;  %396 = vmatpush.msrb.mxu1 %v52_v40 }
  0x3e   :  { %449 = vmatpush.msrb.mxu3 %v100_v34 }
  0x3f   :  { %397 = vmatpush.msrb.mxu1 %v49_v42 }
  0x40   :  { %450 = vmatpush.msrb.mxu3 %v97_v38 }
  0x41   :  { %305 = vmatmul.f32.gmra.mxu2 %v1776_v12  ;;  %398 = vmatpush.msrb.mxu1 %v46_v43 }
  0x42   :  { %199 = vmatmul.f32.gmra.mxu0 %v1776_v12  ;;  %1370 = vmatmul.msk.f32.gmra.mxu1 %vm134_vm0, %v1763_v9 }
  0x43   :  { %451 = vmatpush.msrb.mxu3 %v94_v39 }
  0x45   :  { %1383 = vmatmul.msk.f32.gmra.mxu3 %vm134_vm0, %v1788_v14 }
  0x49   :  { %308 = vmatmul.f32.gmra.mxu2 %v1801_v17 }
  0x4a   :  { %202 = vmatmul.f32.gmra.mxu0 %v1801_v17  ;;  %1371 = vmatmul.msk.f32.gmra.mxu1 %vm134_vm0, %v1788_v14 }
  0x4d   :  { %1384 = vmatmul.msk.f32.gmra.mxu3 %vm134_vm0, %v1810_v18 }
  0x51   :  { %311 = vmatmul.f32.gmra.mxu2 %v1829_v23 }
  0x52   :  { %205 = vmatmul.f32.gmra.mxu0 %v1829_v23  ;;  %1372 = vmatmul.msk.f32.gmra.mxu1 %vm134_vm0, %v1810_v18 }
  0x55   :  { %1385 = vmatmul.msk.f32.gmra.mxu3 %vm134_vm0, %v1847_v27 }
  0x59   :  { %314 = vmatmul.f32.gmra.mxu2 %v1866_v32 }
  0x5a   :  { %208 = vmatmul.f32.gmra.mxu0 %v1866_v32  ;;  %1373 = vmatmul.msk.f32.gmra.mxu1 %vm134_vm0, %v1847_v27 }
  0x5d   :  { %1386 = vmatmul.msk.f32.gmra.mxu3 %vm134_vm0, %v1884_v36 }
  0x61   :  { %317 = vmatmul.f32.gmra.mxu2 %v1903_v41 }
  0x62   :  { %211 = vmatmul.f32.gmra.mxu0 %v1903_v41  ;;  %1374 = vmatmul.msk.f32.gmra.mxu1 %vm134_vm0, %v1884_v36 }
  0x65   :  { %1387 = vmatmul.msk.f32.gmra.mxu3 %vm134_vm0, %v39_v44 }
  0x69   :  { %320 = vmatmul.f32.gmra.mxu2 %v38_v45 }
  0x6a   :  { %214 = vmatmul.f32.gmra.mxu0 %v38_v45  ;;  %1375 = vmatmul.msk.f32.gmra.mxu1 %vm134_vm0, %v39_v44 }
  0x6d   :  { %1388 = vmatmul.msk.f32.gmra.mxu3 %vm134_vm0, %v41_v46 }
  0x71   :  { %323 = vmatmul.f32.gmra.mxu2 %v40_v47 }
  0x72   :  { %217 = vmatmul.f32.gmra.mxu0 %v40_v47  ;;  %1376 = vmatmul.msk.f32.gmra.mxu1 %vm134_vm0, %v41_v46 }
  0x75   :  { %1389 = vmatmul.msk.f32.gmra.mxu3 %vm134_vm0, %v43_v48 }
  0x79   :  { %326 = vmatmul.f32.gmra.mxu2 %v42_v49 }
  0x7a   :  { %220 = vmatmul.f32.gmra.mxu0 %v42_v49  ;;  %1377 = vmatmul.msk.f32.gmra.mxu1 %vm134_vm0, %v43_v48 }
  0x7d   :  { %1390 = vmatmul.msk.f32.vlgmr.msrb.gmra.mxu3 %vm134_vm0, %v1663_v53 }
  0x82   :  { %399 = vmatmul.f32.vlgmr.msrb.gmra.mxu1 %v1688_v60 }
  0x85   :  { %1391 = vmatmul.msk.f32.gmra.mxu3 %vm134_vm0, %v1700_v62 }
  0x8a   :  { %402 = vmatmul.f32.gmra.mxu1 %v1707_v63 }
  0x8d   :  { %1392 = vmatmul.msk.f32.gmra.mxu3 %vm134_vm0, %v1719_v1 }
  0x92   :  { %405 = vmatmul.f32.gmra.mxu1 %v1729_v3 }
  0x95   :  { %1393 = vmatmul.msk.f32.gmra.mxu3 %vm134_vm0, %v1741_v5 }
  0x9a   :  { %408 = vmatmul.f32.gmra.mxu1 %v1754_v8 }
  0x9d   :  { %1394 = vmatmul.msk.f32.gmra.mxu3 %vm134_vm0, %v1763_v9 }
  0x9f   :  { %v1953_v50 = vpop.f32.mrf.mxu0  ;;  %v1955_v51 = vpop.f32.mrf.mxu1 }
  0xa0   :  { %v1957_v52 = vpop.f32.mrf.mxu3 }
  0xa2   :  { %411 = vmatmul.f32.gmra.mxu1 %v1776_v12 }
  0xa4   :  { %v1960_v53 = vpop.f32.mrf.mxu2 }
  0xa5   :  { %1395 = vmatmul.msk.f32.gmra.mxu3 %vm134_vm0, %v1788_v14 }
  0xa7   :  { %v1964_v54 = vpop.f32.mrf.mxu0  ;;  %v1966_v55 = vpop.f32.mrf.mxu1 }
  0xa8   :  { %v1968_v56 = vpop.f32.mrf.mxu3 }
  0xaa   :  { %414 = vmatmul.f32.gmra.mxu1 %v1801_v17 }
  0xac   :  { %v297_v57 = vpop.f32.mrf.mxu2 }
  0xad   :  { %1396 = vmatmul.msk.f32.gmra.mxu3 %vm134_vm0, %v1810_v18  ;;  %v2030_v42 = vadd.f32 %v1968_v56, %v297_v57 }
  0xaf   :  { %v1973_v58 = vpop.f32.mrf.mxu0  ;;  %v1975_v59 = vpop.f32.mrf.mxu1 }
  0xb0   :  { %v1977_v60 = vpop.f32.mrf.mxu3 }
  0xb2   :  { %417 = vmatmul.f32.gmra.mxu1 %v1829_v23 }
  0xb4   :  { %v1980_v61 = vpop.f32.mrf.mxu2 }
  0xb5   :  { %1397 = vmatmul.msk.f32.gmra.mxu3 %vm134_vm0, %v1847_v27 }
  0xb7   :  { %v1984_v62 = vpop.f32.mrf.mxu0  ;;  %v1986_v63 = vpop.f32.mrf.mxu1 }
  0xb8   :  { %v356_v0 = vpop.f32.mrf.mxu3 }
  0xba   :  { %420 = vmatmul.f32.gmra.mxu1 %v1866_v32 }
  0xbc   :  { %v303_v1 = vpop.f32.mrf.mxu2 }
  0xbd   :  { %1398 = vmatmul.msk.f32.gmra.mxu3 %vm134_vm0, %v1884_v36 }
  0xbf   :  { %v200_v2 = vpop.f32.mrf.mxu0  ;;  %v253_v3 = vpop.f32.mrf.mxu1 }
  0xc0   :  { %v1991_v4 = vadd.f32 %v253_v3, %v200_v2  ;;  %v359_v5 = vpop.f32.mrf.mxu3 }
  0xc2   :  { %423 = vmatmul.f32.gmra.mxu1 %v1903_v41 }
  0xc4   :  { %v306_v6 = vpop.f32.mrf.mxu2 }
  0xc5   :  { %v1994_v7 = vadd.f32 %v359_v5, %v306_v6  ;;  %1399 = vmatmul.msk.f32.gmra.mxu3 %vm134_vm0, %v39_v44 }
  0xc7   :  { %v1997_v8 = vpop.f32.mrf.mxu0  ;;  %v1999_v9 = vpop.f32.mrf.mxu1 }
  0xc8   :  { %v362_v10 = vpop.f32.mrf.mxu3 }
  0xca   :  { %426 = vmatmul.f32.gmra.mxu1 %v38_v45 }
  0xcc   :  { %v309_v11 = vpop.f32.mrf.mxu2 }
  0xcd   :  { %1400 = vmatmul.msk.f32.gmra.mxu3 %vm134_vm0, %v41_v46 }
  0xcf   :  { %v2002_v12 = vpop.f32.mrf.mxu0  ;;  %v2004_v13 = vpop.f32.mrf.mxu1 }
  0xd0   :  { %v2006_v14 = vpop.f32.mrf.mxu3 }
  0xd2   :  { %429 = vmatmul.f32.gmra.mxu1 %v40_v47 }
  0xd4   :  { %v2008_v15 = vpop.f32.mrf.mxu2 }
  0xd5   :  { %1401 = vmatmul.msk.f32.gmra.mxu3 %vm134_vm0, %v43_v48 }
  0xd7   :  { %v2011_v16 = vpop.f32.mrf.mxu0  ;;  %v2013_v17 = vpop.f32.mrf.mxu1 }
  0xd8   :  { %v368_v18 = vpop.f32.mrf.mxu3 }
  0xda   :  { %432 = vmatmul.f32.gmra.mxu1 %v42_v49  ;;  %v2034_v49 = vadd.f32 %v356_v0, %v303_v1 }
  0xdc   :  { %v315_v19 = vpop.f32.mrf.mxu2 }
  0xdf   :  { %v212_v20 = vpop.f32.mrf.mxu0  ;;  %v265_v21 = vpop.f32.mrf.mxu1 }
  0xe0   :  { %v2015_v22 = vadd.f32 %v265_v21, %v212_v20  ;;  %v371_v23 = vpop.f32.mrf.mxu3  ;;  %v2038_v20 = vadd.f32 %v362_v10, %v309_v11 }
  0xe4   :  { %v318_v24 = vpop.f32.mrf.mxu2 }
  0xe7   :  { %v2017_v25 = vpop.f32.mrf.mxu0  ;;  %v2019_v26 = vpop.f32.mrf.mxu1 }
  0xe8   :  { %v374_v27 = vpop.f32.mrf.mxu3 }
  0xec   :  { %v321_v28 = vpop.f32.mrf.mxu2 }
  0xef   :  { %v218_v29 = vpop.f32.mrf.mxu0  ;;  %v271_v30 = vpop.f32.mrf.mxu1 }
  0xf0   :  { %v2021_v31 = vadd.f32 %v271_v30, %v218_v29  ;;  %v377_v32 = vpop.f32.mrf.mxu3 }
  0xf4   :  { %v324_v33 = vpop.f32.mrf.mxu2 }
  0xf5   :  { %v2023_v34 = vadd.f32 %v377_v32, %v324_v33  ;;  %v2042_v33 = vadd.f32 %v368_v18, %v315_v19 }
  0xf7   :  { %v2025_v35 = vpop.f32.mrf.mxu1 }
  0xf8   :  { %v2027_v36 = vpop.f32.mrf.mxu3 }
  0xff   :  { %v400_v37 = vpop.f32.mrf.mxu1 }
 0x100   :  { %v453_v38 = vpop.f32.mrf.mxu3 }
 0x101   :  { %v454_v39 = vadd.f32 %v453_v38, %v400_v37 }
 0x107   :  { %v403_v40 = vpop.f32.mrf.mxu1 }
 0x108   :  { %v456_v41 = vpop.f32.mrf.mxu3 }
 0x109   :  { %v457_v43 = vadd.f32 %v456_v41, %v403_v40 }
 0x10b   :  { %v1404_v44 = vpack.i.bf16 %v457_v43, %v2030_v42 }
 0x10d   :  { %1405 = vrot.lane.b32.xlu0 %v1404_v44, %s1470_s0 }
 0x10f   :  { %v406_v45 = vpop.f32.mrf.mxu1 }
 0x110   :  { %v459_v46 = vpop.f32.mrf.mxu3 }
 0x111   :  { %v460_v43 = vadd.f32 %v459_v46, %v406_v45 }
 0x117   :  { %v409_v47 = vpop.f32.mrf.mxu1 }
 0x118   :  { %v462_v48 = vpop.f32.mrf.mxu3 }
 0x119   :  { %v463_v2 = vadd.f32 %v462_v48, %v409_v47  ;;  %v2047_v48 = vadd.f32 %v371_v23, %v318_v24  ;;  %v2061_v23 = vadd.f32 %v1957_v52, %v1960_v53  ;;  %v694_v53 = vld [vmem:[%s3131_s2 + $0xf0] sm:$0xff] }
 0x11a   :  { %952 = vmatpush.msrb.mxu0 %v694_v53 }
 0x11b   :  { %v1414_v3 = vpack.i.bf16 %v463_v2, %v2034_v49  ;;  %v2049_v2 = vadd.f32 %v374_v27, %v321_v28  ;;  %v1449_v19 = vpack.i.bf16 %v2047_v48, %v460_v43  ;;  %v670_v43 = vld [vmem:[%s3131_s2 + $0x30] sm:$0xff] }
 0x11d   :  { %1415 = vrot.lane.b32.xlu1 %v1414_v3, %s1470_s0 }
 0x11f   :  { %v412_v5 = vpop.f32.mrf.mxu1 }
 0x120   :  { %v465_v56 = vpop.f32.mrf.mxu3 }
 0x121   :  { %v466_v24 = vadd.f32 %v465_v56, %v412_v5  ;;  %v692_v5 = vld [vmem:[%s3131_s2 + $0xe0] sm:$0xff] }
 0x122   :  { %953 = vmatpush.msrb.mxu0 %v692_v5  ;;  %v688_v56 = vld [vmem:[%s3131_s2 + $0xc0] sm:$0xff] }
 0x127   :  { %v415_v57 = vpop.f32.mrf.mxu1 }
 0x128   :  { %v468_v6 = vpop.f32.mrf.mxu3 }
 0x129   :  { %v469_v21 = vadd.f32 %v468_v6, %v415_v57  ;;  %v327_v6 = vpop.f32.mrf.mxu2 }
 0x12b   :  { %v1419_v29 = vpack.i.bf16 %v469_v21, %v2038_v20 }
 0x12d   :  { %1420 = vrot.lane.b32.xlu2 %v1419_v29, %s1470_s0 }
 0x12f   :  { %v418_v30 = vpop.f32.mrf.mxu1 }
 0x130   :  { %v471_v32 = vpop.f32.mrf.mxu3 }
 0x131   :  { %v472_v40 = vadd.f32 %v471_v32, %v418_v30  ;;  %v686_v32 = vld [vmem:[%s3131_s2 + $0xb0] sm:$0xff] }
 0x133   :  { %v1424_v11 = vpack.i.bf16 %v472_v40, %v454_v39  ;;  %v2057_v39 = vadd.f32 %v2006_v14, %v2008_v15  ;;  %v2068_v15 = vadd.f32 %v2027_v36, %v327_v6  ;;  %v690_v36 = vld [vmem:[%s3131_s2 + $0xd0] sm:$0xff]  ;;  %v676_v40 = vld [vmem:[%s3131_s2 + $0x60] sm:$0xff]  ;;  %v263_v6 = vadd.f32 %v2013_v17, %v2011_v16 }
 0x134   :  { %954 = vmatpush.msrb.mxu0 %v690_v36  ;;  %v756_v16 = vld [vmem:[%s3131_s2 + $0x2e0] sm:$0xff]  ;;  %v2154_v17 = vadd.f32 %v1977_v60, %v1980_v61 }
 0x135   :  { %v1434_v28 = vpack.i.bf16 %v2057_v39, %v2061_v23 }
 0x136   :  { %955 = vmatpush.msrb.mxu0 %v688_v56  ;;  %v754_v56 = vld [vmem:[%s3131_s2 + $0x2d0] sm:$0xff] }
 0x137   :  { %v421_v0 = vpop.f32.mrf.mxu1 }
 0x138   :  { %v474_v1 = vpop.f32.mrf.mxu3  ;;  %956 = vmatpush.msrb.mxu0 %v686_v32  ;;  %v221_v32 = vpop.f32.mrf.mxu0 }
 0x139   :  { %v475_v37 = vadd.f32 %v474_v1, %v421_v0  ;;  %v684_v0 = vld [vmem:[%s3131_s2 + $0xa0] sm:$0xff]  ;;  %v682_v1 = vld [vmem:[%s3131_s2 + $0x90] sm:$0xff] }
 0x13a   :  { %957 = vmatpush.msrb.mxu0 %v684_v0 }
 0x13b   :  { %v1409_v38 = vpack.i.bf16 %v475_v37, %v2042_v33  ;;  %v680_v37 = vld [vmem:[%s3131_s2 + $0x80] sm:$0xff] }
 0x13c   :  { %958 = vmatpush.msrb.mxu0 %v682_v1  ;;  %v720_v1 = vld [vmem:[%s3131_s2 + $0x1c0] sm:$0xff] }
 0x13d   :  { %1410 = vrot.lane.b32.xlu0 %v1409_v38, %s1470_s0  ;;  %v678_v38 = vld [vmem:[%s3131_s2 + $0x70] sm:$0xff] }
 0x13e   :  { %959 = vmatpush.msrb.mxu0 %v680_v37 }
 0x13f   :  { %v424_v41 = vpop.f32.mrf.mxu1 }
 0x140   :  { %v477_v10 = vpop.f32.mrf.mxu3  ;;  %960 = vmatpush.msrb.mxu0 %v678_v38 }
 0x141   :  { %v478_v30 = vadd.f32 %v477_v10, %v424_v41  ;;  %v674_v41 = vld [vmem:[%s3131_s2 + $0x50] sm:$0xff]  ;;  %v672_v10 = vld [vmem:[%s3131_s2 + $0x40] sm:$0xff] }
 0x142   :  { %961 = vmatpush.msrb.mxu0 %v676_v40  ;;  %v752_v40 = vld [vmem:[%s3131_s2 + $0x2c0] sm:$0xff] }
 0x144   :  { %962 = vmatpush.msrb.mxu0 %v674_v41  ;;  %v886_v41 = vld [vmem:[%s3131_s2 + $0x6f0] sm:$0xff] }
 0x145   :  { %1425 = vrot.lane.b32.xlu0 %v1424_v11, %s1470_s0  ;;  %1072 = vmatpush.msra.mxu1 %v886_v41  ;;  %v269_v41 = vadd.f32 %v2019_v26, %v2017_v25  ;;  %v914_v25 = vld [vmem:[%s3131_s2 + $0x7d0] sm:$0xff] }
 0x146   :  { %963 = vmatpush.msrb.mxu0 %v672_v10 }
 0x147   :  { %v427_v44 = vpop.f32.mrf.mxu1 }
 0x148   :  { %v480_v47 = vpop.f32.mrf.mxu3  ;;  %964 = vmatpush.msrb.mxu0 %v670_v43 }
 0x149   :  { %v481_v18 = vadd.f32 %v480_v47, %v427_v44  ;;  %v668_v44 = vld [vmem:[%s3131_s2 + $0x20] sm:$0xff]  ;;  %v666_v47 = vld [vmem:[%s3131_s2 + $0x10] sm:$0xff] }
 0x14a   :  { %965 = vmatpush.msrb.mxu0 %v668_v44 }
 0x14b   :  { %v1429_v3 = vpack.i.bf16 %v481_v18, %v2049_v2 }
 0x14c   :  { %966 = vmatpush.msrb.mxu0 %v666_v47 }
 0x14d   :  { %1450 = vrot.lane.b32.xlu0 %v1449_v19, %s1470_s0  ;;  %1430 = vrot.lane.b32.xlu1 %v1429_v3, %s1470_s0  ;;  %v664_v3 = vld [vmem:[%s3131_s2] sm:$0xff] }
 0x14e   :  { %967 = vmatpush.msrb.mxu0 %v664_v3  ;;  %v884_v3 = vld [vmem:[%s3131_s2 + $0x6e0] sm:$0xff] }
 0x14f   :  { %v430_v45 = vpop.f32.mrf.mxu1  ;;  %1073 = vmatpush.msra.mxu1 %v884_v3 }
 0x150   :  { %v483_v46 = vpop.f32.mrf.mxu3 }
 0x151   :  { %v484_v27 = vadd.f32 %v483_v46, %v430_v45 }
 0x153   :  { %v1454_v57 = vpack.i.bf16 %v484_v27, %v466_v24 }
 0x155   :  { %1455 = vrot.lane.b32.xlu0 %v1454_v57, %s1470_s0  ;;  %1435 = vrot.lane.b32.xlu1 %v1434_v28, %s1470_s0  ;;  %v245_v57 = vadd.f32 %v1966_v55, %v1964_v54  ;;  %v758_v54 = vld [vmem:[%s3131_s2 + $0x2f0] sm:$0xff] }
 0x156   :  { %v722_v55 = vld [vmem:[%s3131_s2 + $0x1d0] sm:$0xff]  ;;  %992 = vmatpush.msra.mxu0 %v758_v54 }
 0x157   :  { %v433_v21 = vpop.f32.mrf.mxu1 }
 0x158   :  { %v486_v14 = vpop.f32.mrf.mxu3  ;;  %993 = vmatpush.msra.mxu0 %v756_v16  ;;  %v880_v16 = vld [vmem:[%s3131_s2 + $0x6c0] sm:$0xff] }
 0x159   :  { %v487_v29 = vadd.f32 %v486_v14, %v433_v21  ;;  %v726_v14 = vld [vmem:[%s3131_s2 + $0x1f0] sm:$0xff] }
 0x15a   :  { %972 = vmatpush.msrb.mxu2 %v726_v14  ;;  %994 = vmatpush.msra.mxu0 %v754_v56  ;;  %v878_v56 = vld [vmem:[%s3131_s2 + $0x6b0] sm:$0xff] }
 0x15b   :  { %v1439_v52 = vpack.i.bf16 %v487_v29, %v2068_v15  ;;  %v724_v29 = vld [vmem:[%s3131_s2 + $0x1e0] sm:$0xff] }
 0x15c   :  { %973 = vmatpush.msrb.mxu2 %v724_v29  ;;  %995 = vmatpush.msra.mxu0 %v752_v40  ;;  %v251_v40 = vadd.f32 %v1986_v63, %v1984_v62  ;;  %v708_v63 = vld [vmem:[%s3131_s2 + $0x160] sm:$0xff] }
 0x15d   :  { %547 = vrot.lane.b32.xlu1 %v478_v30, %s1470_s0  ;;  %1440 = vrot.lane.b32.xlu2 %v1439_v52, %s1470_s0 }
 0x15e   :  { %974 = vmatpush.msrb.mxu2 %v722_v55  ;;  %v746_v55 = vld [vmem:[%s3131_s2 + $0x290] sm:$0xff] }
 0x160   :  { %975 = vmatpush.msrb.mxu2 %v720_v1 }
 0x17f   :  { %v2109_v11 = vpop.permute.xlu0 %1405 }
 0x180   :  { %v1408_v18 = vunpack.i.h.bf16 %v2109_v11  ;;  %v1407_v19 = vunpack.i.l.bf16 %v2109_v11 }
 0x182   :  { %v563_v24 = vsel %vm561_vm1, %v1407_v19, %v1408_v18  ;;  %v718_v19 = vld [vmem:[%s3131_s2 + $0x1b0] sm:$0xff] }
 0x183   :  { %v600_v30 = vmax.f32 %v245_v57, %v563_v24  ;;  %v275_v24 = vadd.f32 %v2025_v35, %v221_v32  ;;  %v882_v35 = vld [vmem:[%s3131_s2 + $0x6d0] sm:$0xff]  ;;  %976 = vmatpush.msrb.mxu2 %v718_v19  ;;  %v876_v19 = vld [vmem:[%s3131_s2 + $0x6a0] sm:$0xff] }
 0x184   :  { %1074 = vmatpush.msra.mxu1 %v882_v35 }
 0x186   :  { %1075 = vmatpush.msra.mxu1 %v880_v16  ;;  %v260_v16 = vadd.f32 %v2004_v13, %v2002_v12  ;;  %v868_v12 = vld [vmem:[%s3131_s2 + $0x660] sm:$0xff] }
 0x187   :  { %v2125_v45 = vpop.permute.xlu2 %1420 }
 0x188   :  { %v1423_v52 = vunpack.i.h.bf16 %v2125_v45  ;;  %v1422_v53 = vunpack.i.l.bf16 %v2125_v45  ;;  %1076 = vmatpush.msra.mxu1 %v878_v56  ;;  %v906_v45 = vld [vmem:[%s3131_s2 + $0x790] sm:$0xff] }
 0x18a   :  { %v567_v37 = vsel %vm561_vm1, %v1422_v53, %v1423_v52  ;;  %1077 = vmatpush.msra.mxu1 %v876_v19  ;;  %v862_v19 = vld [vmem:[%s3131_s2 + $0x630] sm:$0xff] }
 0x18f   :  { %v2159_v0 = vpop.permute.xlu1 %1415 }
 0x190   :  { %v1418_v29 = vunpack.i.h.bf16 %v2159_v0 }
 0x192   :  { %v605_v3 = vmax.f32 %v2034_v49, %v1418_v29  ;;  %v740_v49 = vld [vmem:[%s3131_s2 + $0x260] sm:$0xff] }
 0x1af   :  { %v1411_v46 = vpop.permute.xlu0 %1410 }
 0x1b0   :  { %v1413_v27 = vunpack.i.h.bf16 %v1411_v46  ;;  %v1412_v28 = vunpack.i.l.bf16 %v1411_v46  ;;  %v257_v46 = vadd.f32 %v1999_v9, %v1997_v8  ;;  %v716_v9 = vld [vmem:[%s3131_s2 + $0x1a0] sm:$0xff] }
 0x1b1   :  { %977 = vmatpush.msrb.mxu2 %v716_v9  ;;  %v912_v9 = vld [vmem:[%s3131_s2 + $0x7c0] sm:$0xff] }
 0x1b2   :  { %v569_v21 = vsel %vm561_vm1, %v1412_v28, %v1413_v27  ;;  %v750_v28 = vld [vmem:[%s3131_s2 + $0x2b0] sm:$0xff] }
 0x1b3   :  { %v612_v5 = vmax.f32 %v263_v6, %v569_v21  ;;  %v608_v21 = vmax.f32 %v257_v46, %v567_v37  ;;  %996 = vmatpush.msra.mxu0 %v750_v28  ;;  %v710_v37 = vld [vmem:[%s3131_s2 + $0x170] sm:$0xff] }
 0x1b5   :  { %v624_v36 = vmax.f32 %v600_v30, %v612_v5  ;;  %v1417_v30 = vunpack.i.l.bf16 %v2159_v0  ;;  %v714_v5 = vld [vmem:[%s3131_s2 + $0x190] sm:$0xff] }
 0x1b6   :  { %978 = vmatpush.msrb.mxu2 %v714_v5 }
 0x1b7   :  { %v2167_v60 = vpop.permute.xlu0 %1425  ;;  %v2169_v61 = vpop.permute.xlu2 %1440  ;;  %v1444_v38 = vpack.i.bf16 %v2154_v17, %v624_v36  ;;  %v712_v36 = vld [vmem:[%s3131_s2 + $0x180] sm:$0xff]  ;;  %v565_v32 = vsel %vm561_vm1, %v1417_v30, %v1418_v29 }
 0x1b8   :  { %v1428_v10 = vunpack.i.h.bf16 %v2167_v60  ;;  %v1427_v43 = vunpack.i.l.bf16 %v2167_v60  ;;  %v1443_v44 = vunpack.i.h.bf16 %v2169_v61  ;;  %v1442_v47 = vunpack.i.l.bf16 %v2169_v61  ;;  %979 = vmatpush.msrb.mxu2 %v712_v36  ;;  %v704_v30 = vld [vmem:[%s3131_s2 + $0x140] sm:$0xff]  ;;  %v702_v36 = vld [vmem:[%s3131_s2 + $0x130] sm:$0xff] }
 0x1b9   :  { %1445 = vrot.lane.b32.xlu2 %v1444_v38, %s1470_s0  ;;  %v916_v38 = vld [vmem:[%s3131_s2 + $0x7e0] sm:$0xff]  ;;  %v604_v26 = vmax.f32 %v251_v40, %v565_v32  ;;  %v866_v61 = vld [vmem:[%s3131_s2 + $0x650] sm:$0xff] }
 0x1ba   :  { %v2198_v57 = vmax.f32 %v2057_v39, %v1428_v10  ;;  %v2203_v6 = vmax.f32 %v2061_v23, %v1427_v43  ;;  %v573_v8 = vsel %vm561_vm1, %v1442_v47, %v1443_v44  ;;  %v613_v39 = vmax.f32 %v2042_v33, %v1413_v27  ;;  %v748_v23 = vld [vmem:[%s3131_s2 + $0x2a0] sm:$0xff]  ;;  %v918_v33 = vld [vmem:[%s3131_s2 + $0x7f0] sm:$0xff]  ;;  %980 = vmatpush.msrb.mxu2 %v710_v37 }
 0x1bb   :  { %v620_v14 = vmax.f32 %v275_v24, %v573_v8  ;;  %v601_v27 = vmax.f32 %v2030_v42, %v1408_v18  ;;  %997 = vmatpush.msra.mxu0 %v748_v23  ;;  %1092 = vmatpush.msra.mxu3 %v918_v33  ;;  %v744_v18 = vld [vmem:[%s3131_s2 + $0x280] sm:$0xff]  ;;  %v742_v47 = vld [vmem:[%s3131_s2 + $0x270] sm:$0xff]  ;;  %v621_v13 = vmax.f32 %v2068_v15, %v1443_v44 }
 0x1bc   :  { %v623_v53 = vmax.f32 %v2203_v6, %v2198_v57  ;;  %v706_v8 = vld [vmem:[%s3131_s2 + $0x150] sm:$0xff]  ;;  %981 = vmatpush.msrb.mxu2 %v708_v63  ;;  %v700_v60 = vld [vmem:[%s3131_s2 + $0x120] sm:$0xff]  ;;  %v609_v15 = vmax.f32 %v2038_v20, %v1423_v52 }
 0x1bd   :  { %v632_v54 = vmax.f32 %v608_v21, %v620_v14  ;;  %v625_v42 = vmax.f32 %v601_v27, %v613_v39  ;;  %998 = vmatpush.msra.mxu0 %v746_v55  ;;  %1093 = vmatpush.msra.mxu3 %v916_v38  ;;  %v738_v39 = vld [vmem:[%s3131_s2 + $0x250] sm:$0xff]  ;;  %v872_v21 = vld [vmem:[%s3131_s2 + $0x680] sm:$0xff]  ;;  %v1464_v14 = vpack.i.bf16 %v2023_v34, %v1994_v7 }
 0x1be   :  { %982 = vmatpush.msrb.mxu2 %v706_v8  ;;  %v736_v27 = vld [vmem:[%s3131_s2 + $0x240] sm:$0xff]  ;;  %v242_v55 = vadd.f32 %v1955_v51, %v1953_v50  ;;  %v734_v51 = vld [vmem:[%s3131_s2 + $0x230] sm:$0xff]  ;;  %v633_v20 = vmax.f32 %v609_v15, %v621_v13  ;;  %v719_v15 = vld [vmem:[%s3131_s2 + $0x1b8] sm:$0xff] }
 0x1bf   :  { %v1431_v11 = vpop.permute.xlu1 %1430  ;;  %654 = vrot.lane.b32.xlu0 %v632_v54, %s1470_s0  ;;  %999 = vmatpush.msra.mxu0 %v744_v18  ;;  %v870_v54 = vld [vmem:[%s3131_s2 + $0x670] sm:$0xff]  ;;  %v732_v32 = vld [vmem:[%s3131_s2 + $0x220] sm:$0xff] }
 0x1c0   :  { %v1433_v0 = vunpack.i.h.bf16 %v1431_v11  ;;  %v1432_v1 = vunpack.i.l.bf16 %v1431_v11  ;;  %1094 = vmatpush.msra.mxu3 %v914_v25  ;;  %v910_v11 = vld [vmem:[%s3131_s2 + $0x7b0] sm:$0xff]  ;;  %983 = vmatpush.msrb.mxu2 %v704_v30  ;;  %v696_v52 = vld [vmem:[%s3131_s2 + $0x100] sm:$0xff] }
 0x1c1   :  { %638 = vrot.lane.b32.xlu2 %v625_v42, %s1470_s0  ;;  %1000 = vmatpush.msra.mxu0 %v742_v47  ;;  %v698_v44 = vld [vmem:[%s3131_s2 + $0x110] sm:$0xff]  ;;  %v864_v37 = vld [vmem:[%s3131_s2 + $0x640] sm:$0xff] }
 0x1c2   :  { %v617_v46 = vmax.f32 %v2049_v2, %v1433_v0  ;;  %v571_v62 = vsel %vm561_vm1, %v1432_v1, %v1433_v0  ;;  %v874_v2 = vld [vmem:[%s3131_s2 + $0x690] sm:$0xff]  ;;  %1095 = vmatpush.msra.mxu3 %v912_v9  ;;  %984 = vmatpush.msrb.mxu2 %v702_v36  ;;  %v728_v38 = vld [vmem:[%s3131_s2 + $0x200] sm:$0xff] }
 0x1c3   :  { %v616_v24 = vmax.f32 %v269_v41, %v571_v62  ;;  %1001 = vmatpush.msra.mxu0 %v740_v49  ;;  %1078 = vmatpush.msra.mxu1 %v874_v2  ;;  %v730_v0 = vld [vmem:[%s3131_s2 + $0x210] sm:$0xff]  ;;  %v904_v40 = vld [vmem:[%s3131_s2 + $0x780] sm:$0xff] }
 0x1c4   :  { %v629_v28 = vmax.f32 %v605_v3, %v617_v46  ;;  %1096 = vmatpush.msra.mxu3 %v910_v11  ;;  %985 = vmatpush.msrb.mxu2 %v700_v60  ;;  %v790_v1 = vld [vmem:[%s3131_s2 + $0x3f0] sm:$0xff]  ;;  %v788_v41 = vld [vmem:[%s3131_s2 + $0x3e0] sm:$0xff] }
 0x1c5   :  { %v628_v35 = vmax.f32 %v604_v26, %v616_v24  ;;  %1002 = vmatpush.msra.mxu0 %v738_v39  ;;  %1079 = vmatpush.msra.mxu1 %v872_v21  ;;  %v822_v47 = vld [vmem:[%s3131_s2 + $0x4f0] sm:$0xff]  ;;  %v820_v62 = vld [vmem:[%s3131_s2 + $0x4e0] sm:$0xff] }
 0x1c6   :  { %986 = vmatpush.msrb.mxu2 %v698_v44  ;;  %v902_v3 = vld [vmem:[%s3131_s2 + $0x770] sm:$0xff]  ;;  %v860_v63 = vld [vmem:[%s3131_s2 + $0x620] sm:$0xff]  ;;  %v759_v44 = vld [vmem:[%s3131_s2 + $0x2f8] sm:$0xff] }
 0x1c7   :  { %v1436_v23 = vpop.permute.xlu1 %1435  ;;  %v1459_v29 = vpack.i.bf16 %v629_v28, %v628_v35  ;;  %1003 = vmatpush.msra.mxu0 %v736_v27  ;;  %1080 = vmatpush.msra.mxu1 %v870_v54  ;;  %v786_v46 = vld [vmem:[%s3131_s2 + $0x3d0] sm:$0xff]  ;;  %v900_v25 = vld [vmem:[%s3131_s2 + $0x760] sm:$0xff] }
 0x1c8   :  { %v1438_v5 = vunpack.i.h.bf16 %v1436_v23  ;;  %v1437_v33 = vunpack.i.l.bf16 %v1436_v23  ;;  %987 = vmatpush.msrb.mxu2 %v696_v52  ;;  %v784_v26 = vld [vmem:[%s3131_s2 + $0x3c0] sm:$0xff]  ;;  %v818_v24 = vld [vmem:[%s3131_s2 + $0x4d0] sm:$0xff]  ;;  %v757_v52 = vld [vmem:[%s3131_s2 + $0x2e8] sm:$0xff] }
 0x1c9   :  { %1465 = vrot.lane.b32.xlu2 %v1464_v14, %s1470_s0  ;;  %1460 = vrot.lane.b32.xlu1 %v1459_v29, %s1470_s0  ;;  %v858_v49 = vld [vmem:[%s3131_s2 + $0x610] sm:$0xff]  ;;  %v816_v8 = vld [vmem:[%s3131_s2 + $0x4c0] sm:$0xff] }
 0x1ca   :  { %v568_v42 = vsel %vm561_vm1, %v1438_v5, %v1428_v10  ;;  %v562_v50 = vsel %vm561_vm1, %v1437_v33, %v1427_v43  ;;  %v908_v10 = vld [vmem:[%s3131_s2 + $0x7a0] sm:$0xff]  ;;  %1004 = vmatpush.msra.mxu0 %v734_v51  ;;  %1081 = vmatpush.msra.mxu1 %v868_v12  ;;  %v898_v2 = vld [vmem:[%s3131_s2 + $0x750] sm:$0xff]  ;;  %v727_v14 = vld [vmem:[%s3131_s2 + $0x1f8] sm:$0xff] }
 0x1cb   :  { %v598_v18 = vmax.f32 %v242_v55, %v562_v50  ;;  %v610_v56 = vmax.f32 %v260_v16, %v568_v42  ;;  %1097 = vmatpush.msra.mxu3 %v908_v10  ;;  %1012 = vmatpush.msra.mxu2 %v790_v1  ;;  %v782_v28 = vld [vmem:[%s3131_s2 + $0x3b0] sm:$0xff]  ;;  %v856_v9 = vld [vmem:[%s3131_s2 + $0x600] sm:$0xff]  ;;  %v725_v5 = vld [vmem:[%s3131_s2 + $0x1e8] sm:$0xff] }
 0x1cc   :  { %1082 = vmatpush.msra.mxu1 %v866_v61  ;;  %1005 = vmatpush.msra.mxu0 %v732_v32  ;;  %v896_v35 = vld [vmem:[%s3131_s2 + $0x740] sm:$0xff]  ;;  %v814_v21 = vld [vmem:[%s3131_s2 + $0x4b0] sm:$0xff]  ;;  %v723_v55 = vld [vmem:[%s3131_s2 + $0x1d8] sm:$0xff] }
 0x1cd   :  { %v2342_v43 = vmax.f32 %v598_v18, %v610_v56  ;;  %1098 = vmatpush.msra.mxu3 %v906_v45  ;;  %1013 = vmatpush.msra.mxu2 %v788_v41  ;;  %v780_v39 = vld [vmem:[%s3131_s2 + $0x3a0] sm:$0xff]  ;;  %v894_v23 = vld [vmem:[%s3131_s2 + $0x730] sm:$0xff]  ;;  %v721_v42 = vld [vmem:[%s3131_s2 + $0x1c8] sm:$0xff] }
 0x1ce   :  { %1006 = vmatpush.msra.mxu0 %v730_v0  ;;  %1083 = vmatpush.msra.mxu1 %v864_v37  ;;  %v778_v29 = vld [vmem:[%s3131_s2 + $0x390] sm:$0xff]  ;;  %v812_v30 = vld [vmem:[%s3131_s2 + $0x4a0] sm:$0xff]  ;;  %v715_v1 = vld [vmem:[%s3131_s2 + $0x198] sm:$0xff] }
 0x1cf   :  { %968 = vmatmul.f32.vlgmr.msrb.gmra.mxu0 %v2342_v43  ;;  %1099 = vmatpush.msra.mxu3 %v904_v40  ;;  %v892_v33 = vld [vmem:[%s3131_s2 + $0x720] sm:$0xff]  ;;  %v810_v54 = vld [vmem:[%s3131_s2 + $0x490] sm:$0xff]  ;;  %v755_v37 = vld [vmem:[%s3131_s2 + $0x2d8] sm:$0xff] }
 0x1d0   :  { %1007 = vmatpush.msra.mxu0 %v728_v38  ;;  %1084 = vmatpush.msra.mxu1 %v862_v19  ;;  %v776_v27 = vld [vmem:[%s3131_s2 + $0x380] sm:$0xff]  ;;  %v890_v16 = vld [vmem:[%s3131_s2 + $0x710] sm:$0xff]  ;;  %v713_v40 = vld [vmem:[%s3131_s2 + $0x188] sm:$0xff] }
 0x1d1   :  { %656 = vrot.lane.b32.xlu1 %v633_v20, %s1470_s0  ;;  %1100 = vmatpush.msra.mxu3 %v902_v3  ;;  %v774_v36 = vld [vmem:[%s3131_s2 + $0x370] sm:$0xff]  ;;  %v808_v11 = vld [vmem:[%s3131_s2 + $0x480] sm:$0xff]  ;;  %v717_v20 = vld [vmem:[%s3131_s2 + $0x1a8] sm:$0xff] }
 0x1d2   :  { %1032 = vmatpush.msrb.mxu0 %v822_v47  ;;  %1014 = vmatpush.msra.mxu2 %v786_v46  ;;  %v888_v50 = vld [vmem:[%s3131_s2 + $0x700] sm:$0xff]  ;;  %v806_v12 = vld [vmem:[%s3131_s2 + $0x470] sm:$0xff]  ;;  %v753_v41 = vld [vmem:[%s3131_s2 + $0x2c8] sm:$0xff] }
 0x1d3   :  { %1085 = vmatpush.msra.mxu1 %v860_v63  ;;  %1101 = vmatpush.msra.mxu3 %v900_v25  ;;  %v772_v51 = vld [vmem:[%s3131_s2 + $0x360] sm:$0xff]  ;;  %v770_v13 = vld [vmem:[%s3131_s2 + $0x350] sm:$0xff]  ;;  %v711_v19 = vld [vmem:[%s3131_s2 + $0x178] sm:$0xff] }
 0x1d4   :  { %1033 = vmatpush.msrb.mxu0 %v820_v62  ;;  %1015 = vmatpush.msra.mxu2 %v784_v26  ;;  %v804_v18 = vld [vmem:[%s3131_s2 + $0x460] sm:$0xff]  ;;  %v766_v60 = vld [vmem:[%s3131_s2 + $0x330] sm:$0xff]  ;;  %v751_v3 = vld [vmem:[%s3131_s2 + $0x2b8] sm:$0xff] }
 0x1d5   :  { %1086 = vmatpush.msra.mxu1 %v858_v49  ;;  %1102 = vmatpush.msra.mxu3 %v898_v2  ;;  %v768_v56 = vld [vmem:[%s3131_s2 + $0x340] sm:$0xff]  ;;  %v762_v61 = vld [vmem:[%s3131_s2 + $0x310] sm:$0xff]  ;;  %v709_v62 = vld [vmem:[%s3131_s2 + $0x168] sm:$0xff] }
 0x1d6   :  { %1034 = vmatpush.msrb.mxu0 %v818_v24  ;;  %1016 = vmatpush.msra.mxu2 %v782_v28  ;;  %v764_v10 = vld [vmem:[%s3131_s2 + $0x320] sm:$0xff]  ;;  %v802_v32 = vld [vmem:[%s3131_s2 + $0x450] sm:$0xff]  ;;  %v749_v63 = vld [vmem:[%s3131_s2 + $0x2a8] sm:$0xff] }
 0x1d7   :  { %1087 = vmatpush.msra.mxu1 %v856_v9  ;;  %1103 = vmatpush.msra.mxu3 %v896_v35  ;;  %v760_v45 = vld [vmem:[%s3131_s2 + $0x300] sm:$0xff]  ;;  %v798_v38 = vld [vmem:[%s3131_s2 + $0x430] sm:$0xff]  ;;  %v707_v26 = vld [vmem:[%s3131_s2 + $0x158] sm:$0xff] }
 0x1d8   :  { %1035 = vmatpush.msrb.mxu0 %v816_v8  ;;  %1017 = vmatpush.msra.mxu2 %v780_v39  ;;  %v800_v0 = vld [vmem:[%s3131_s2 + $0x440] sm:$0xff]  ;;  %v794_v46 = vld [vmem:[%s3131_s2 + $0x410] sm:$0xff]  ;;  %v747_v24 = vld [vmem:[%s3131_s2 + $0x298] sm:$0xff] }
 0x1d9   :  { %1152 = vmatpush.msrb.mxu1 %v727_v14  ;;  %1104 = vmatpush.msra.mxu3 %v894_v23  ;;  %v796_v47 = vld [vmem:[%s3131_s2 + $0x420] sm:$0xff]  ;;  %v705_v49 = vld [vmem:[%s3131_s2 + $0x148] sm:$0xff]  ;;  %v703_v28 = vld [vmem:[%s3131_s2 + $0x138] sm:$0xff] }
 0x1da   :  { %1036 = vmatpush.msrb.mxu0 %v814_v21  ;;  %1018 = vmatpush.msra.mxu2 %v778_v29  ;;  %v792_v25 = vld [vmem:[%s3131_s2 + $0x400] sm:$0xff]  ;;  %v745_v2 = vld [vmem:[%s3131_s2 + $0x288] sm:$0xff]  ;;  %v743_v8 = vld [vmem:[%s3131_s2 + $0x278] sm:$0xff] }
 0x1db   :  { %1153 = vmatpush.msrb.mxu1 %v725_v5  ;;  %1105 = vmatpush.msra.mxu3 %v892_v33  ;;  %v701_v9 = vld [vmem:[%s3131_s2 + $0x128] sm:$0xff]  ;;  %v699_v39 = vld [vmem:[%s3131_s2 + $0x118] sm:$0xff]  ;;  %v2592_v5 = vpop.permute.xlu0 %1450  ;;  %v950_v6 = vld [vmem:[%s3131_s2 + $0x8f0] sm:$0xff] }
 0x1dc   :  { %1037 = vmatpush.msrb.mxu0 %v812_v30  ;;  %1019 = vmatpush.msra.mxu2 %v776_v27  ;;  %v741_v35 = vld [vmem:[%s3131_s2 + $0x268] sm:$0xff]  ;;  %v739_v21 = vld [vmem:[%s3131_s2 + $0x258] sm:$0xff]  ;;  %v2597_v27 = vpop.permute.xlu1 %547 }
 0x1dd   :  { %1154 = vmatpush.msrb.mxu1 %v723_v55  ;;  %1106 = vmatpush.msra.mxu3 %v890_v16  ;;  %v697_v14 = vld [vmem:[%s3131_s2 + $0x108] sm:$0xff]  ;;  %v735_v29 = vld [vmem:[%s3131_s2 + $0x238] sm:$0xff] }
 0x1de   :  { %1038 = vmatpush.msrb.mxu0 %v810_v54  ;;  %1020 = vmatpush.msra.mxu2 %v774_v36  ;;  %v737_v23 = vld [vmem:[%s3131_s2 + $0x248] sm:$0xff]  ;;  %v731_v33 = vld [vmem:[%s3131_s2 + $0x218] sm:$0xff]  ;;  %v1453_v54 = vunpack.i.h.bf16 %v2592_v5  ;;  %v1452_v36 = vunpack.i.l.bf16 %v2592_v5 }
 0x1df   :  { %1155 = vmatpush.msrb.mxu1 %v721_v42  ;;  %1107 = vmatpush.msra.mxu3 %v888_v50  ;;  %v733_v30 = vld [vmem:[%s3131_s2 + $0x228] sm:$0xff] }
 0x1e0   :  { %1039 = vmatpush.msrb.mxu0 %v808_v11  ;;  %1021 = vmatpush.msra.mxu2 %v772_v51  ;;  %v729_v55 = vld [vmem:[%s3131_s2 + $0x208] sm:$0xff]  ;;  %v570_v11 = vsel %vm561_vm1, %v1453_v54, %v2597_v27  ;;  %v248_v51 = vadd.f32 %v1975_v59, %v1973_v58  ;;  %v852_v58 = vld [vmem:[%s3131_s2 + $0x5e0] sm:$0xff]  ;;  %v850_v59 = vld [vmem:[%s3131_s2 + $0x5d0] sm:$0xff] }
 0x1e1   :  { %1156 = vmatpush.msrb.mxu1 %v719_v15  ;;  %1172 = vmatpush.msrb.mxu3 %v759_v44  ;;  %v948_v15 = vld [vmem:[%s3131_s2 + $0x8e0] sm:$0xff]  ;;  %v847_v54 = vld [vmem:[%s3131_s2 + $0x5b8] sm:$0xff] }
 0x1e2   :  { %1040 = vmatpush.msrb.mxu0 %v806_v12  ;;  %1022 = vmatpush.msra.mxu2 %v770_v13  ;;  %v854_v12 = vld [vmem:[%s3131_s2 + $0x5f0] sm:$0xff]  ;;  %v844_v44 = vld [vmem:[%s3131_s2 + $0x5a0] sm:$0xff] }
 0x1e3   :  { %1157 = vmatpush.msrb.mxu1 %v717_v20  ;;  %1173 = vmatpush.msrb.mxu3 %v757_v52  ;;  %v842_v20 = vld [vmem:[%s3131_s2 + $0x590] sm:$0xff]  ;;  %v944_v52 = vld [vmem:[%s3131_s2 + $0x8c0] sm:$0xff] }
 0x1e4   :  { %1041 = vmatpush.msrb.mxu0 %v804_v18  ;;  %1023 = vmatpush.msra.mxu2 %v768_v56  ;;  %v614_v56 = vmax.f32 %v2015_v22, %v570_v11  ;;  %v848_v22 = vld [vmem:[%s3131_s2 + $0x5c0] sm:$0xff]  ;;  %v930_v11 = vld [vmem:[%s3131_s2 + $0x850] sm:$0xff] }
 0x1e5   :  { %1158 = vmatpush.msrb.mxu1 %v715_v1  ;;  %1174 = vmatpush.msrb.mxu3 %v755_v37  ;;  %v840_v1 = vld [vmem:[%s3131_s2 + $0x580] sm:$0xff]  ;;  %v942_v37 = vld [vmem:[%s3131_s2 + $0x8b0] sm:$0xff] }
 0x1e6   :  { %1024 = vmatpush.msra.mxu2 %v766_v60  ;;  %1042 = vmatpush.msrb.mxu0 %v802_v32  ;;  %v946_v32 = vld [vmem:[%s3131_s2 + $0x8d0] sm:$0xff] }
 0x1e7   :  { %1159 = vmatpush.msrb.mxu1 %v713_v40  ;;  %1175 = vmatpush.msrb.mxu3 %v753_v41 }
 0x1e8   :  { %1025 = vmatpush.msra.mxu2 %v764_v10  ;;  %1043 = vmatpush.msrb.mxu0 %v800_v0 }
 0x1e9   :  { %1160 = vmatpush.msrb.mxu1 %v711_v19  ;;  %1176 = vmatpush.msrb.mxu3 %v751_v3  ;;  %v838_v19 = vld [vmem:[%s3131_s2 + $0x570] sm:$0xff]  ;;  %v940_v3 = vld [vmem:[%s3131_s2 + $0x8a0] sm:$0xff] }
 0x1ea   :  { %1026 = vmatpush.msra.mxu2 %v762_v61  ;;  %1044 = vmatpush.msrb.mxu0 %v798_v38  ;;  %v846_v61 = vld [vmem:[%s3131_s2 + $0x5b0] sm:$0xff] }
 0x1eb   :  { %1161 = vmatpush.msrb.mxu1 %v709_v62  ;;  %1177 = vmatpush.msrb.mxu3 %v749_v63 }
 0x1ec   :  { %1027 = vmatpush.msra.mxu2 %v760_v45  ;;  %1045 = vmatpush.msrb.mxu0 %v796_v47  ;;  %v1456_v45 = vpop.permute.xlu0 %1455 }
 0x1ed   :  { %1162 = vmatpush.msrb.mxu1 %v707_v26  ;;  %1178 = vmatpush.msrb.mxu3 %v747_v24  ;;  %v1458_v38 = vunpack.i.h.bf16 %v1456_v45  ;;  %v1457_v40 = vunpack.i.l.bf16 %v1456_v45  ;;  %v836_v26 = vld [vmem:[%s3131_s2 + $0x560] sm:$0xff]  ;;  %v938_v24 = vld [vmem:[%s3131_s2 + $0x890] sm:$0xff] }
 0x1ee   :  { %1046 = vmatpush.msrb.mxu0 %v794_v46 }
 0x1ef   :  { %1163 = vmatpush.msrb.mxu1 %v705_v49  ;;  %1179 = vmatpush.msrb.mxu3 %v745_v2  ;;  %v834_v2 = vld [vmem:[%s3131_s2 + $0x550] sm:$0xff] }
 0x1f0   :  { %1047 = vmatpush.msrb.mxu0 %v792_v25 }
 0x1f1   :  { %1164 = vmatpush.msrb.mxu1 %v703_v28  ;;  %1180 = vmatpush.msrb.mxu3 %v743_v8  ;;  %v832_v28 = vld [vmem:[%s3131_s2 + $0x540] sm:$0xff]  ;;  %v853_v8 = vld [vmem:[%s3131_s2 + $0x5e8] sm:$0xff] }
 0x1f3   :  { %1165 = vmatpush.msrb.mxu1 %v701_v9  ;;  %1181 = vmatpush.msrb.mxu3 %v741_v35  ;;  %v607_v9 = vmax.f32 %v1994_v7, %v1457_v40  ;;  %v619_v35 = vmax.f32 %v2023_v34, %v1458_v38  ;;  %v932_v7 = vld [vmem:[%s3131_s2 + $0x860] sm:$0xff] }
 0x1f4   :  { %v828_v34 = vld [vmem:[%s3131_s2 + $0x520] sm:$0xff] }
 0x1f5   :  { %1166 = vmatpush.msrb.mxu1 %v699_v39  ;;  %1182 = vmatpush.msrb.mxu3 %v739_v21  ;;  %v934_v39 = vld [vmem:[%s3131_s2 + $0x870] sm:$0xff] }
 0x1f6   :  { %v830_v21 = vld [vmem:[%s3131_s2 + $0x530] sm:$0xff] }
 0x1f7   :  { %1167 = vmatpush.msrb.mxu1 %v697_v14  ;;  %1183 = vmatpush.msrb.mxu3 %v737_v23  ;;  %v851_v14 = vld [vmem:[%s3131_s2 + $0x5d8] sm:$0xff]  ;;  %v849_v23 = vld [vmem:[%s3131_s2 + $0x5c8] sm:$0xff] }
 0x1f9   :  { %1184 = vmatpush.msrb.mxu3 %v735_v29  ;;  %v631_v29 = vmax.f32 %v607_v9, %v619_v35  ;;  %v827_v9 = vld [vmem:[%s3131_s2 + $0x518] sm:$0xff] }
 0x1fa   :  { %v783_v35 = vld [vmem:[%s3131_s2 + $0x3b8] sm:$0xff] }
 0x1fb   :  { %1185 = vmatpush.msrb.mxu3 %v733_v30 }
 0x1fd   :  { %1186 = vmatpush.msrb.mxu3 %v731_v33  ;;  %v826_v33 = vld [vmem:[%s3131_s2 + $0x510] sm:$0xff] }
 0x1ff   :  { %1187 = vmatpush.msrb.mxu3 %v729_v55 }
 0x213   :  { %v1446_v16 = vpop.permute.xlu2 %1445 }
 0x214   :  { %v1448_v42 = vunpack.i.h.bf16 %v1446_v16  ;;  %v1447_v50 = vunpack.i.l.bf16 %v1446_v16  ;;  %v887_v16 = vld [vmem:[%s3131_s2 + $0x6f8] sm:$0xff] }
 0x216   :  { %v564_v13 = vsel %vm561_vm1, %v1448_v42, %v1452_v36  ;;  %v2618_v18 = vsel %vm561_vm1, %v623_v53, %v1447_v50  ;;  %v824_v42 = vld [vmem:[%s3131_s2 + $0x500] sm:$0xff] }
 0x217   :  { %v602_v60 = vmax.f32 %v248_v51, %v564_v13  ;;  %988 = vmatmul.f32.vlgmr.msrb.gmra.mxu2 %v2618_v18  ;;  %v885_v51 = vld [vmem:[%s3131_s2 + $0x6e8] sm:$0xff]  ;;  %v695_v13 = vld [vmem:[%s3131_s2 + $0xf8] sm:$0xff] }
 0x218   :  { %1052 = vmatpush.msrb.mxu2 %v854_v12  ;;  %v928_v12 = vld [vmem:[%s3131_s2 + $0x840] sm:$0xff] }
 0x219   :  { %v2628_v10 = vmax.f32 %v602_v60, %v614_v56  ;;  %v883_v56 = vld [vmem:[%s3131_s2 + $0x6d8] sm:$0xff]  ;;  %v926_v60 = vld [vmem:[%s3131_s2 + $0x830] sm:$0xff] }
 0x21a   :  { %1053 = vmatpush.msrb.mxu2 %v852_v58  ;;  %v693_v58 = vld [vmem:[%s3131_s2 + $0xe8] sm:$0xff] }
 0x21b   :  { %v639_v57 = vpop.permute.xlu2 %638 }
 0x21c   :  { %v2637_v53 = vsel %vm561_vm1, %v1447_v50, %v639_v57  ;;  %1054 = vmatpush.msrb.mxu2 %v850_v59  ;;  %v845_v50 = vld [vmem:[%s3131_s2 + $0x5a8] sm:$0xff]  ;;  %v615_v57 = vmax.f32 %v2047_v48, %v2597_v27  ;;  %v603_v48 = vmax.f32 %v2154_v17, %v1452_v36  ;;  %v839_v27 = vld [vmem:[%s3131_s2 + $0x578] sm:$0xff] }
 0x21d   :  { %1008 = vmatmul.f32.vlgmr.msra.gmra.mxu0 %v2637_v53  ;;  %v841_v59 = vld [vmem:[%s3131_s2 + $0x588] sm:$0xff] }
 0x21e   :  { %1055 = vmatpush.msrb.mxu2 %v848_v22  ;;  %1112 = vmatpush.msra.mxu0 %v950_v6  ;;  %v881_v22 = vld [vmem:[%s3131_s2 + $0x6c8] sm:$0xff]  ;;  %v924_v6 = vld [vmem:[%s3131_s2 + $0x820] sm:$0xff]  ;;  %v627_v5 = vmax.f32 %v603_v48, %v615_v57  ;;  %v823_v57 = vld [vmem:[%s3131_s2 + $0x4f8] sm:$0xff] }
 0x21f   :  { %1028 = vmatmul.f32.vlgmr.msra.gmra.mxu2 %v2628_v10  ;;  %v689_v17 = vld [vmem:[%s3131_s2 + $0xc8] sm:$0xff] }
 0x220   :  { %1056 = vmatpush.msrb.mxu2 %v846_v61  ;;  %1113 = vmatpush.msra.mxu0 %v948_v15  ;;  %v691_v61 = vld [vmem:[%s3131_s2 + $0xd8] sm:$0xff]  ;;  %v817_v48 = vld [vmem:[%s3131_s2 + $0x4c8] sm:$0xff] }
 0x221   :  { %v879_v15 = vld [vmem:[%s3131_s2 + $0x6b8] sm:$0xff] }
 0x222   :  { %1057 = vmatpush.msrb.mxu2 %v844_v44  ;;  %1114 = vmatpush.msra.mxu0 %v946_v32  ;;  %v922_v32 = vld [vmem:[%s3131_s2 + $0x810] sm:$0xff] }
 0x223   :  { %v1466_v0 = vpop.permute.xlu2 %1465 }
 0x224   :  { %v1468_v41 = vunpack.i.h.bf16 %v1466_v0  ;;  %v1467_v47 = vunpack.i.l.bf16 %v1466_v0  ;;  %1058 = vmatpush.msrb.mxu2 %v842_v20  ;;  %1115 = vmatpush.msra.mxu0 %v944_v52  ;;  %v837_v20 = vld [vmem:[%s3131_s2 + $0x568] sm:$0xff]  ;;  %v920_v0 = vld [vmem:[%s3131_s2 + $0x800] sm:$0xff] }
 0x225   :  { %v877_v52 = vld [vmem:[%s3131_s2 + $0x6a8] sm:$0xff] }
 0x226   :  { %v572_v46 = vsel %vm561_vm1, %v1468_v41, %v1458_v38  ;;  %v566_v62 = vsel %vm561_vm1, %v1467_v47, %v1457_v40  ;;  %1059 = vmatpush.msrb.mxu2 %v840_v1  ;;  %1116 = vmatpush.msra.mxu0 %v942_v37  ;;  %v687_v1 = vld [vmem:[%s3131_s2 + $0xb8] sm:$0xff]  ;;  %v685_v47 = vld [vmem:[%s3131_s2 + $0xa8] sm:$0xff] }
 0x227   :  { %v606_v63 = vmax.f32 %v1991_v4, %v566_v62  ;;  %v618_v25 = vmax.f32 %v2021_v31, %v572_v46  ;;  %v855_v4 = vld [vmem:[%s3131_s2 + $0x5f8] sm:$0xff]  ;;  %v936_v31 = vld [vmem:[%s3131_s2 + $0x880] sm:$0xff]  ;;  %v873_v46 = vld [vmem:[%s3131_s2 + $0x688] sm:$0xff] }
 0x228   :  { %1060 = vmatpush.msrb.mxu2 %v838_v19  ;;  %1117 = vmatpush.msra.mxu0 %v940_v3  ;;  %v791_v38 = vld [vmem:[%s3131_s2 + $0x3f8] sm:$0xff]  ;;  %v789_v19 = vld [vmem:[%s3131_s2 + $0x3e8] sm:$0xff] }
 0x229   :  { %v2681_v49 = vmax.f32 %v606_v63, %v618_v25  ;;  %v835_v40 = vld [vmem:[%s3131_s2 + $0x558] sm:$0xff]  ;;  %v833_v3 = vld [vmem:[%s3131_s2 + $0x548] sm:$0xff] }
 0x22a   :  { %1061 = vmatpush.msrb.mxu2 %v836_v26  ;;  %1118 = vmatpush.msra.mxu0 %v938_v24  ;;  %v875_v41 = vld [vmem:[%s3131_s2 + $0x698] sm:$0xff]  ;;  %v681_v24 = vld [vmem:[%s3131_s2 + $0x88] sm:$0xff] }
 0x22b   :  { %1088 = vmatmul.f32.vlgmr.msra.gmra.mxu1 %v2681_v49  ;;  %v683_v62 = vld [vmem:[%s3131_s2 + $0x98] sm:$0xff] }
 0x22c   :  { %1062 = vmatpush.msrb.mxu2 %v834_v2  ;;  %1232 = vmatpush.msra.mxu1 %v855_v4  ;;  %v787_v63 = vld [vmem:[%s3131_s2 + $0x3d8] sm:$0xff]  ;;  %v785_v2 = vld [vmem:[%s3131_s2 + $0x3c8] sm:$0xff] }
 0x22d   :  { %1119 = vmatpush.msra.mxu0 %v936_v31  ;;  %v831_v25 = vld [vmem:[%s3131_s2 + $0x538] sm:$0xff]  ;;  %v829_v4 = vld [vmem:[%s3131_s2 + $0x528] sm:$0xff] }
 0x22e   :  { %1063 = vmatpush.msrb.mxu2 %v832_v28  ;;  %1233 = vmatpush.msra.mxu1 %v853_v8  ;;  %v871_v26 = vld [vmem:[%s3131_s2 + $0x678] sm:$0xff]  ;;  %v869_v28 = vld [vmem:[%s3131_s2 + $0x668] sm:$0xff] }
 0x22f   :  { %1120 = vmatpush.msra.mxu0 %v934_v39  ;;  %v679_v8 = vld [vmem:[%s3131_s2 + $0x78] sm:$0xff] }
 0x230   :  { %1064 = vmatpush.msrb.mxu2 %v830_v21  ;;  %1234 = vmatpush.msra.mxu1 %v851_v14  ;;  %v867_v39 = vld [vmem:[%s3131_s2 + $0x658] sm:$0xff]  ;;  %v677_v14 = vld [vmem:[%s3131_s2 + $0x68] sm:$0xff] }
 0x231   :  { %v2719_v30 = vpop.permute.xlu0 %654  ;;  %1121 = vmatpush.msra.mxu0 %v932_v7  ;;  %v825_v7 = vld [vmem:[%s3131_s2 + $0x508] sm:$0xff] }
 0x232   :  { %1065 = vmatpush.msrb.mxu2 %v828_v34  ;;  %1235 = vmatpush.msra.mxu1 %v849_v23  ;;  %v2729_v55 = vsel %vm561_vm1, %v631_v29, %v2719_v30  ;;  %v781_v34 = vld [vmem:[%s3131_s2 + $0x3a8] sm:$0xff]  ;;  %v675_v29 = vld [vmem:[%s3131_s2 + $0x58] sm:$0xff] }
 0x233   :  { %1108 = vmatmul.f32.vlgmr.msra.gmra.mxu3 %v2729_v55  ;;  %1168 = vmatmul.f32.vlgmr.msrb.gmra.mxu1 %v2618_v18  ;;  %v843_v18 = vld [vmem:[%s3131_s2 + $0x598] sm:$0xff]  ;;  %v865_v23 = vld [vmem:[%s3131_s2 + $0x648] sm:$0xff] }
 0x234   :  { %1066 = vmatpush.msrb.mxu2 %v826_v33  ;;  %1236 = vmatpush.msra.mxu1 %v847_v54  ;;  %v863_v33 = vld [vmem:[%s3131_s2 + $0x638] sm:$0xff]  ;;  %v673_v54 = vld [vmem:[%s3131_s2 + $0x48] sm:$0xff] }
 0x235   :  { %1252 = vmatpush.msra.mxu3 %v887_v16  ;;  %1122 = vmatpush.msra.mxu0 %v930_v11  ;;  %v777_v16 = vld [vmem:[%s3131_s2 + $0x388] sm:$0xff] }
 0x236   :  { %1067 = vmatpush.msrb.mxu2 %v824_v42  ;;  %1237 = vmatpush.msra.mxu1 %v845_v50  ;;  %v861_v11 = vld [vmem:[%s3131_s2 + $0x628] sm:$0xff]  ;;  %v671_v42 = vld [vmem:[%s3131_s2 + $0x38] sm:$0xff] }
 0x237   :  { %1253 = vmatpush.msra.mxu3 %v885_v51  ;;  %1123 = vmatpush.msra.mxu0 %v928_v12  ;;  %v775_v50 = vld [vmem:[%s3131_s2 + $0x378] sm:$0xff]  ;;  %v669_v12 = vld [vmem:[%s3131_s2 + $0x28] sm:$0xff] }
 0x238   :  { %1132 = vmatpush.msra.mxu2 %v695_v13  ;;  %1238 = vmatpush.msra.mxu1 %v843_v18  ;;  %v859_v51 = vld [vmem:[%s3131_s2 + $0x618] sm:$0xff]  ;;  %v773_v13 = vld [vmem:[%s3131_s2 + $0x368] sm:$0xff] }
 0x239   :  { %1254 = vmatpush.msra.mxu3 %v883_v56  ;;  %1124 = vmatpush.msra.mxu0 %v926_v60  ;;  %v857_v18 = vld [vmem:[%s3131_s2 + $0x608] sm:$0xff]  ;;  %v667_v56 = vld [vmem:[%s3131_s2 + $0x18] sm:$0xff] }
 0x23a   :  { %1133 = vmatpush.msra.mxu2 %v693_v58  ;;  %1239 = vmatpush.msra.mxu1 %v841_v59  ;;  %v771_v60 = vld [vmem:[%s3131_s2 + $0x358] sm:$0xff]  ;;  %v665_v58 = vld [vmem:[%s3131_s2 + $0x8] sm:$0xff] }
 0x23b   :  { %1255 = vmatpush.msra.mxu3 %v881_v22  ;;  %1125 = vmatpush.msra.mxu0 %v924_v6  ;;  %v1461_v44 = vpop.permute.xlu1 %1460  ;;  %v769_v59 = vld [vmem:[%s3131_s2 + $0x348] sm:$0xff]  ;;  %v767_v22 = vld [vmem:[%s3131_s2 + $0x338] sm:$0xff] }
 0x23c   :  { %1134 = vmatpush.msra.mxu2 %v691_v61  ;;  %v1463_v36 = vunpack.i.h.bf16 %v1461_v44  ;;  %v1462_v45 = vunpack.i.l.bf16 %v1461_v44  ;;  %1188 = vmatmul.f32.vlgmr.msrb.gmra.mxu3 %v2637_v53  ;;  %v765_v6 = vld [vmem:[%s3131_s2 + $0x328] sm:$0xff]  ;;  %v819_v61 = vld [vmem:[%s3131_s2 + $0x4d8] sm:$0xff] }
 0x23d   :  { %1240 = vmatpush.msra.mxu1 %v839_v27  ;;  %1256 = vmatpush.msra.mxu3 %v879_v15  ;;  %v761_v27 = vld [vmem:[%s3131_s2 + $0x308] sm:$0xff]  ;;  %v815_v15 = vld [vmem:[%s3131_s2 + $0x4b8] sm:$0xff] }
 0x23e   :  { %1126 = vmatpush.msra.mxu0 %v922_v32  ;;  %1135 = vmatpush.msra.mxu2 %v689_v17  ;;  %v2809_v53 = vsel %vm561_vm1, %v627_v5, %v1462_v45  ;;  %v649_v37 = vsel %vm561_vm1, %v1462_v45, %v1463_v36  ;;  %v919_v44 = vld [vmem:[%s3131_s2 + $0x7f8] sm:$0xff]  ;;  %v813_v32 = vld [vmem:[%s3131_s2 + $0x4a8] sm:$0xff] }
 0x23f   :  { %1241 = vmatpush.msra.mxu1 %v837_v20  ;;  %1257 = vmatpush.msra.mxu3 %v877_v52  ;;  %v917_v17 = vld [vmem:[%s3131_s2 + $0x7e8] sm:$0xff]  ;;  %v811_v5 = vld [vmem:[%s3131_s2 + $0x498] sm:$0xff] }
 0x240   :  { %1127 = vmatpush.msra.mxu0 %v920_v0  ;;  %1136 = vmatpush.msra.mxu2 %v687_v1  ;;  %v915_v36 = vld [vmem:[%s3131_s2 + $0x7d8] sm:$0xff]  ;;  %v809_v45 = vld [vmem:[%s3131_s2 + $0x488] sm:$0xff] }
 0x241   :  { %1048 = vmatmul.f32.vlgmr.msrb.gmra.mxu0 %v2809_v53  ;;  %1068 = vmatmul.f32.vlgmr.msrb.gmra.mxu2 %v649_v37  ;;  %v807_v20 = vld [vmem:[%s3131_s2 + $0x478] sm:$0xff]  ;;  %v805_v0 = vld [vmem:[%s3131_s2 + $0x468] sm:$0xff] }
 0x242   :  { %1192 = vmatpush.msrb.mxu0 %v791_v38  ;;  %1242 = vmatpush.msra.mxu1 %v835_v40  ;;  %v911_v52 = vld [vmem:[%s3131_s2 + $0x7b8] sm:$0xff]  ;;  %v909_v1 = vld [vmem:[%s3131_s2 + $0x7a8] sm:$0xff] }
 0x243   :  { %1258 = vmatpush.msra.mxu3 %v875_v41  ;;  %1137 = vmatpush.msra.mxu2 %v685_v47  ;;  %v657_v31 = vpop.permute.xlu1 %656  ;;  %v907_v38 = vld [vmem:[%s3131_s2 + $0x798] sm:$0xff]  ;;  %v801_v40 = vld [vmem:[%s3131_s2 + $0x448] sm:$0xff] }
 0x244   :  { %1193 = vmatpush.msrb.mxu0 %v789_v19  ;;  %1243 = vmatpush.msra.mxu1 %v833_v3  ;;  %v2872_v21 = vsel %vm561_vm1, %v2719_v30, %v657_v31  ;;  %v779_v30 = vld [vmem:[%s3131_s2 + $0x398] sm:$0xff]  ;;  %v905_v41 = vld [vmem:[%s3131_s2 + $0x788] sm:$0xff] }
 0x245   :  { %1259 = vmatpush.msra.mxu3 %v873_v46  ;;  %1138 = vmatpush.msra.mxu2 %v683_v62  ;;  %v799_v47 = vld [vmem:[%s3131_s2 + $0x438] sm:$0xff]  ;;  %v797_v3 = vld [vmem:[%s3131_s2 + $0x428] sm:$0xff] }
 0x246   :  { %1194 = vmatpush.msrb.mxu0 %v787_v63  ;;  %1244 = vmatpush.msra.mxu1 %v831_v25  ;;  %v903_v19 = vld [vmem:[%s3131_s2 + $0x778] sm:$0xff]  ;;  %v901_v46 = vld [vmem:[%s3131_s2 + $0x768] sm:$0xff] }
 0x247   :  { %1260 = vmatpush.msra.mxu3 %v871_v26  ;;  %1139 = vmatpush.msra.mxu2 %v681_v24  ;;  %v795_v62 = vld [vmem:[%s3131_s2 + $0x418] sm:$0xff]  ;;  %v793_v25 = vld [vmem:[%s3131_s2 + $0x408] sm:$0xff] }
 0x248   :  { %1195 = vmatpush.msrb.mxu0 %v785_v2  ;;  %1245 = vmatpush.msra.mxu1 %v829_v4  ;;  %v899_v63 = vld [vmem:[%s3131_s2 + $0x758] sm:$0xff]  ;;  %v897_v26 = vld [vmem:[%s3131_s2 + $0x748] sm:$0xff] }
 0x249   :  { %1261 = vmatpush.msra.mxu3 %v869_v28  ;;  %1140 = vmatpush.msra.mxu2 %v679_v8  ;;  %v951_v24 = vld [vmem:[%s3131_s2 + $0x8f8] sm:$0xff]  ;;  %v949_v4 = vld [vmem:[%s3131_s2 + $0x8e8] sm:$0xff] }
 0x24a   :  { %1128 = vmatmul.f32.vlgmr.msra.gmra.mxu0 %v2872_v21  ;;  %1246 = vmatpush.msra.mxu1 %v827_v9  ;;  %v895_v2 = vld [vmem:[%s3131_s2 + $0x738] sm:$0xff]  ;;  %v893_v31 = vld [vmem:[%s3131_s2 + $0x728] sm:$0xff] }
 0x24b   :  { %1196 = vmatpush.msrb.mxu0 %v783_v35  ;;  %1262 = vmatpush.msra.mxu3 %v867_v39  ;;  %v947_v28 = vld [vmem:[%s3131_s2 + $0x8d8] sm:$0xff]  ;;  %v945_v8 = vld [vmem:[%s3131_s2 + $0x8c8] sm:$0xff] }
 0x24c   :  { %1141 = vmatpush.msra.mxu2 %v677_v14  ;;  %1247 = vmatpush.msra.mxu1 %v825_v7  ;;  %v889_v9 = vld [vmem:[%s3131_s2 + $0x708] sm:$0xff]  ;;  %v943_v35 = vld [vmem:[%s3131_s2 + $0x8b8] sm:$0xff] }
 0x24d   :  { %1197 = vmatpush.msrb.mxu0 %v781_v34  ;;  %1263 = vmatpush.msra.mxu3 %v865_v23  ;;  %v941_v39 = vld [vmem:[%s3131_s2 + $0x8a8] sm:$0xff]  ;;  %v939_v14 = vld [vmem:[%s3131_s2 + $0x898] sm:$0xff] }
 0x24e   :  { %1142 = vmatpush.msra.mxu2 %v675_v29  ;;  %1248 = vmatmul.f32.vlgmr.msra.gmra.mxu1 %v649_v37  ;;  %v803_v37 = vld [vmem:[%s3131_s2 + $0x458] sm:$0xff]  ;;  %v937_v7 = vld [vmem:[%s3131_s2 + $0x888] sm:$0xff] }
 0x24f   :  { %1198 = vmatpush.msrb.mxu0 %v779_v30  ;;  %1264 = vmatpush.msra.mxu3 %v863_v33  ;;  %v935_v34 = vld [vmem:[%s3131_s2 + $0x878] sm:$0xff]  ;;  %v933_v23 = vld [vmem:[%s3131_s2 + $0x868] sm:$0xff] }
 0x250   :  { %1143 = vmatpush.msra.mxu2 %v673_v54  ;;  %v929_v29 = vld [vmem:[%s3131_s2 + $0x848] sm:$0xff]  ;;  %v927_v30 = vld [vmem:[%s3131_s2 + $0x838] sm:$0xff] }
 0x251   :  { %1199 = vmatpush.msrb.mxu0 %v777_v16  ;;  %1265 = vmatpush.msra.mxu3 %v861_v11  ;;  %v925_v33 = vld [vmem:[%s3131_s2 + $0x828] sm:$0xff]  ;;  %v923_v54 = vld [vmem:[%s3131_s2 + $0x818] sm:$0xff]  ;;  %v969_v11 = vpop.f32.mrf.mxu0 }
 0x252   :  { %1144 = vmatpush.msra.mxu2 %v671_v42  ;;  %v921_v16 = vld [vmem:[%s3131_s2 + $0x808] sm:$0xff] }
 0x253   :  { %1200 = vmatpush.msrb.mxu0 %v775_v50  ;;  %1266 = vmatpush.msra.mxu3 %v859_v51 }
 0x254   :  { %1145 = vmatpush.msra.mxu2 %v669_v12 }
 0x255   :  { %1201 = vmatpush.msrb.mxu0 %v773_v13  ;;  %1267 = vmatpush.msra.mxu3 %v857_v18 }
 0x256   :  { %1146 = vmatpush.msra.mxu2 %v667_v56  ;;  %1268 = vmatmul.f32.vlgmr.msra.gmra.mxu3 %v2681_v49  ;;  %v821_v49 = vld [vmem:[%s3131_s2 + $0x4e8] sm:$0xff] }
 0x257   :  { %1202 = vmatpush.msrb.mxu0 %v771_v60  ;;  %v1325_v60 = vld [vmem:[%s3132_s3 + $0x38] sm:$0xff] }
 0x258   :  { %1147 = vmatpush.msra.mxu2 %v665_v58  ;;  %v1324_v58 = vld [vmem:[%s3132_s3 + $0x30] sm:$0xff]  ;;  %1337 = vmatpush.msrb.mxu1 %v1325_v60 }
 0x259   :  { %1148 = vmatmul.f32.vlgmr.msra.gmra.mxu2 %v2342_v43  ;;  %1203 = vmatpush.msrb.mxu0 %v769_v59  ;;  %v763_v43 = vld [vmem:[%s3131_s2 + $0x318] sm:$0xff] }
 0x25a   :  { %1212 = vmatpush.msrb.mxu2 %v823_v57  ;;  %1338 = vmatpush.msrb.mxu1 %v1324_v58 }
 0x25b   :  { %1204 = vmatpush.msrb.mxu0 %v767_v22 }
 0x25c   :  { %1213 = vmatpush.msrb.mxu2 %v821_v49 }
 0x25d   :  { %1205 = vmatpush.msrb.mxu0 %v765_v6  ;;  %v1322_v6 = vld [vmem:[%s3132_s3 + $0x20] sm:$0xff] }
 0x25e   :  { %1214 = vmatpush.msrb.mxu2 %v819_v61 }
 0x25f   :  { %1206 = vmatpush.msrb.mxu0 %v763_v43  ;;  %v1321_v43 = vld [vmem:[%s3132_s3 + $0x18] sm:$0xff] }
 0x260   :  { %1215 = vmatpush.msrb.mxu2 %v817_v48 }
 0x261   :  { %1207 = vmatpush.msrb.mxu0 %v761_v27 }
 0x262   :  { %1216 = vmatpush.msrb.mxu2 %v815_v15  ;;  %1208 = vmatmul.f32.vlgmr.msrb.gmra.mxu0 %v2628_v10  ;;  %v913_v10 = vld [vmem:[%s3131_s2 + $0x7c8] sm:$0xff]  ;;  %v1320_v15 = vld [vmem:[%s3132_s3 + $0x10] sm:$0xff] }
 0x263   :  { %1272 = vmatpush.msra.mxu0 %v919_v44 }
 0x264   :  { %1217 = vmatpush.msrb.mxu2 %v813_v32 }
 0x265   :  { %1273 = vmatpush.msra.mxu0 %v917_v17  ;;  %v1319_v17 = vld [vmem:[%s3132_s3 + $0x8] sm:$0xff] }
 0x266   :  { %1218 = vmatpush.msrb.mxu2 %v811_v5 }
 0x267   :  { %1274 = vmatpush.msra.mxu0 %v915_v36 }
 0x268   :  { %1219 = vmatpush.msrb.mxu2 %v809_v45 }
 0x269   :  { %1275 = vmatpush.msra.mxu0 %v913_v10 }
 0x26a   :  { %1220 = vmatpush.msrb.mxu2 %v807_v20 }
 0x26b   :  { %1276 = vmatpush.msra.mxu0 %v911_v52 }
 0x26c   :  { %1221 = vmatpush.msrb.mxu2 %v805_v0 }
 0x26d   :  { %1277 = vmatpush.msra.mxu0 %v909_v1 }
 0x26e   :  { %1222 = vmatpush.msrb.mxu2 %v803_v37 }
 0x26f   :  { %1278 = vmatpush.msra.mxu0 %v907_v38 }
 0x270   :  { %1223 = vmatpush.msrb.mxu2 %v801_v40 }
 0x271   :  { %1279 = vmatpush.msra.mxu0 %v905_v41 }
 0x272   :  { %1224 = vmatpush.msrb.mxu2 %v799_v47 }
 0x273   :  { %1280 = vmatpush.msra.mxu0 %v903_v19 }
 0x274   :  { %1225 = vmatpush.msrb.mxu2 %v797_v3 }
 0x275   :  { %1281 = vmatpush.msra.mxu0 %v901_v46 }
 0x276   :  { %1226 = vmatpush.msrb.mxu2 %v795_v62 }
 0x277   :  { %1282 = vmatpush.msra.mxu0 %v899_v63 }
 0x278   :  { %1227 = vmatpush.msrb.mxu2 %v793_v25  ;;  %v1318_v25 = vld [vmem:[%s3132_s3] sm:$0xff] }
 0x279   :  { %1228 = vmatmul.f32.vlgmr.msrb.gmra.mxu2 %v2809_v53  ;;  %1283 = vmatpush.msra.mxu0 %v897_v26  ;;  %v891_v53 = vld [vmem:[%s3131_s2 + $0x718] sm:$0xff] }
 0x27a   :  { %1292 = vmatpush.msra.mxu2 %v951_v24 }
 0x27b   :  { %1284 = vmatpush.msra.mxu0 %v895_v2 }
 0x27c   :  { %1293 = vmatpush.msra.mxu2 %v949_v4  ;;  %v1469_v4 = vld [vmem:[%s3133_s4] ss:$0 sm:$0xff] }
 0x27d   :  { %1285 = vmatpush.msra.mxu0 %v893_v31 }
 0x27e   :  { %1294 = vmatpush.msra.mxu2 %v947_v28 }
 0x27f   :  { %1286 = vmatpush.msra.mxu0 %v891_v53 }
 0x280   :  { %1295 = vmatpush.msra.mxu2 %v945_v8 }
 0x281   :  { %1287 = vmatpush.msra.mxu0 %v889_v9 }
 0x282   :  { %1296 = vmatpush.msra.mxu2 %v943_v35  ;;  %1288 = vmatmul.f32.vlgmr.msra.gmra.mxu0 %v2729_v55  ;;  %v931_v55 = vld [vmem:[%s3131_s2 + $0x858] sm:$0xff] }
 0x284   :  { %1297 = vmatpush.msra.mxu2 %v941_v39 }
 0x286   :  { %1298 = vmatpush.msra.mxu2 %v939_v14 }
 0x288   :  { %1299 = vmatpush.msra.mxu2 %v937_v7 }
 0x28a   :  { %1300 = vmatpush.msra.mxu2 %v935_v34 }
 0x28c   :  { %1301 = vmatpush.msra.mxu2 %v933_v23 }
 0x28e   :  { %1302 = vmatpush.msra.mxu2 %v931_v55 }
 0x290   :  { %1303 = vmatpush.msra.mxu2 %v929_v29 }
 0x292   :  { %1304 = vmatpush.msra.mxu2 %v927_v30 }
 0x294   :  { %1305 = vmatpush.msra.mxu2 %v925_v33 }
 0x296   :  { %1306 = vmatpush.msra.mxu2 %v923_v54 }
 0x298   :  { %1307 = vmatpush.msra.mxu2 %v921_v16 }
 0x299   :  { %1308 = vmatmul.f32.vlgmr.msra.gmra.mxu2 %v2872_v21  ;;  %v1323_v21 = vld [vmem:[%s3132_s3 + $0x28] sm:$0xff] }
 0x29a   :  { %v989_v42 = vpop.f32.mrf.mxu2  ;;  %v1009_v50 = vpop.f32.mrf.mxu0  ;;  %1339 = vmatpush.msrb.mxu1 %v1323_v21 }
 0x29b   :  { %v990_v61 = vadd.f32 %v989_v42, %v969_v11 }
 0x29c   :  { %1340 = vmatpush.msrb.mxu1 %v1322_v6 }
 0x29d   :  { %v1010_v32 = vadd.f32 %v1009_v50, %v990_v61 }
 0x29e   :  { %1341 = vmatpush.msrb.mxu1 %v1321_v43 }
 0x2a0   :  { %1342 = vmatpush.msrb.mxu1 %v1320_v15 }
 0x2a2   :  { %v1029_v51 = vpop.f32.mrf.mxu2  ;;  %1343 = vmatpush.msrb.mxu1 %v1319_v17 }
 0x2a3   :  { %v1030_v36 = vadd.f32 %v1029_v51, %v1010_v32 }
 0x2a4   :  { %1344 = vmatpush.msrb.mxu1 %v1318_v25 }
 0x2a8   :  { %v1089_v13 = vpop.f32.mrf.mxu1 }
 0x2b0   :  { %v1169_v22 = vpop.f32.mrf.mxu1 }
 0x2b6   :  { %v1109_v56 = vpop.f32.mrf.mxu3 }
 0x2be   :  { %v1049_v12 = vpop.f32.mrf.mxu0 }
 0x2bf   :  { %v1189_v48 = vpop.f32.mrf.mxu3  ;;  %v1050_v10 = vadd.f32 %v1049_v12, %v1030_v36 }
 0x2c4   :  { %v1069_v18 = vpop.f32.mrf.mxu2 }
 0x2c5   :  { %v1070_v52 = vadd.f32 %v1069_v18, %v1050_v10 }
 0x2c7   :  { %v1129_v59 = vpop.f32.mrf.mxu0  ;;  %v1090_v37 = vadd.f32 %v1089_v13, %v1070_v52 }
 0x2c9   :  { %v1110_v41 = vadd.f32 %v1109_v56, %v1090_v37 }
 0x2cb   :  { %v1249_v0 = vpop.f32.mrf.mxu1  ;;  %v1130_v46 = vadd.f32 %v1129_v59, %v1110_v41 }
 0x2d9   :  { %v1269_v38 = vpop.f32.mrf.mxu3 }
 0x2dc   :  { %v1149_v57 = vpop.f32.mrf.mxu2 }
 0x2dd   :  { %v1170_v49 = vadd.f32 %v1169_v22, %v1149_v57 }
 0x2df   :  { %v1190_v27 = vadd.f32 %v1189_v48, %v1170_v49  ;;  %v1209_v44 = vpop.f32.mrf.mxu0 }
 0x2e1   :  { %v1210_v45 = vadd.f32 %v1209_v44, %v1190_v27 }
 0x2fc   :  { %v1229_v5 = vpop.f32.mrf.mxu2 }
 0x2fd   :  { %v1230_v20 = vadd.f32 %v1229_v5, %v1210_v45 }
 0x2ff   :  { %v1250_v1 = vadd.f32 %v1249_v0, %v1230_v20  ;;  %v1289_v47 = vpop.f32.mrf.mxu0 }
 0x301   :  { %v1270_v40 = vadd.f32 %v1269_v38, %v1250_v1 }
 0x303   :  { %v1290_v19 = vadd.f32 %v1289_v47, %v1270_v40 }
 0x31c   :  { %v1309_v3 = vpop.f32.mrf.mxu2 }
 0x31d   :  { %v1310_v62 = vadd.f32 %v1309_v3, %v1290_v19 }
 0x31f   :  { %v1312_v63 = vmax.f32 %v1130_v46, %v1310_v62 }
 0x321   :  { %1314 = vrot.lane.b32.xlu2 %v1312_v63, %s1470_s0 }
 0x37b   :  { %v1315_v26 = vpop.permute.xlu2 %1314 }
 0x37c   :  { %v1317_v24 = vmax.f32 %v1312_v63, %v1315_v26 }
 0x37e   :  { %1402 = vmatmul.msk.f32.vlgmr.msrb.gmra.mxu1 %vm561_vm1, %v1317_v24 }
 0x3fb   :  { %v1346_v2 = vpop.f32.mrf.mxu1 }
 0x3fc   :  { %vm1349_vm2 = vcmp.ge.f32.partialorder %v1346_v2, 0.0  ;;  %v1350_v31 = vmul.f32 0.01, %v1346_v2 }
 0x3fe   :  { %v1351_v28 = vsel %vm1349_vm2, %v1346_v2, %v1350_v31 }
 0x3ff   :  { %v1356_v53 = vmul.f32 %v1469_v4, %v1351_v28 }
 0x401   :  { %v1358_v8 = vsel %vm1357_vm3, %v1356_v53, 0.0 }
 0x402   :  { %1359 = vadd.xlane.f32.xlu0 %v1358_v8 }
 0x475   :  { %v1360_v9 = vpop.xlane.xlu0 %1359 }
 0x476   :  { %1361 = vst [vmem:[%s3134_s5] sm:$0xff] %v1360_v9 }

</bundles_post_ra>
